<compile_context>
chip_gen: v7x
topology: tpu7x:2x2x1
jax: 0.10.0
libtpu: 0.0.40
codegen_flags: <defaults>
</compile_context>

<pallas_src>
import functools

import jax
import jax.numpy as jnp
from jax.experimental import pallas as pl
from jax.experimental.pallas import tpu as pltpu


# Small stand-ins for the original sizes (12288->16384, 2->16384, 32768->2048,
# 2048->1024, 1024->1), keeping the exact dataflow.
D_IN, D_LBL = 384, 2
H1 = 512            # fc1_1 / fc1_2 output; virtual concat -> 2*H1
H2 = 256            # fc2 output (BatchNorm1d)
H3 = 128            # fc3 output (BatchNorm1d)
D_OUT = 1
OUT_PAD = 128       # lane-dense output width; column 0 carries the real result

# --- packed small-parameter layout (all offsets are multiples of 128) -------
OFF_B11 = 0                      # b1_1              (H1)
OFF_B12 = OFF_B11 + H1           # b1_2              (H1)
OFF_B2 = OFF_B12 + H1            # b2                (H2)
OFF_G2 = OFF_B2 + H2             # gamma2            (H2)
OFF_BE2 = OFF_G2 + H2            # beta2             (H2)
OFF_B3 = OFF_BE2 + H2            # b3                (H3)
OFF_G3 = OFF_B3 + H3             # gamma3            (H3)
OFF_BE3 = OFF_G3 + H3            # beta3             (H3)
OFF_W12A = OFF_BE3 + H3          # w1_2 row 0        (H1)
OFF_W12B = OFF_W12A + H1         # w1_2 row 1        (H1)
OFF_W4 = OFF_W12B + H1           # w4 column         (H3)
OFF_B4 = OFF_W4 + H3             # b4                (1)
PACK_RAW = OFF_B4 + 1
PACK_TOTAL = ((PACK_RAW + 127) // 128) * 128   # lane-pad to multiple of 128


# ---------------------------------------------------------------------------
# Single fused kernel: the entire discriminator forward pass.
# ---------------------------------------------------------------------------
def _disc_fused_kernel(
    inp_ref, lbl_ref,
    w11_ref, w2t_ref, w2b_ref, w3_ref,
    pk_ref,
    o_ref,
    *, slope, eps,
):
    f32 = jnp.float32
    bf16 = jnp.bfloat16

    def lrelu(v):
        # slope in (0,1) -> leaky_relu == max(v, slope*v): one VPU op.
        return jnp.maximum(v, slope * v)

    def bn(v, g, b):
        m = jnp.mean(v, axis=0, keepdims=True)
        var = jnp.mean((v - m) ** 2, axis=0, keepdims=True)   # biased, PyTorch train mode
        return (v - m) * jax.lax.rsqrt(var + eps) * g + b

    # --- fc1_1 + leaky_relu (MXU, bf16 operands, f32 accumulation) ----------
    x = jnp.dot(inp_ref[...].astype(bf16), w11_ref[...],
                preferred_element_type=f32) + pk_ref[:, OFF_B11:OFF_B11 + H1]
    x = lrelu(x)

    # --- fc1_2 + leaky_relu: K=2 -> VPU broadcast-multiply, no MXU pass -----
    lbl = lbl_ref[...]
    y = (lbl[:, 0:1] * pk_ref[:, OFF_W12A:OFF_W12A + H1]
         + lbl[:, 1:2] * pk_ref[:, OFF_W12B:OFF_W12B + H1]
         + pk_ref[:, OFF_B12:OFF_B12 + H1])
    y = lrelu(y)

    # --- fc2 on the virtual concat [x, y]: split-weight matmul, no concat ---
    h = (jnp.dot(x.astype(bf16), w2t_ref[...], preferred_element_type=f32)
         + jnp.dot(y.astype(bf16), w2b_ref[...], preferred_element_type=f32)
         + pk_ref[:, OFF_B2:OFF_B2 + H2])
    h = lrelu(bn(h, pk_ref[:, OFF_G2:OFF_G2 + H2], pk_ref[:, OFF_BE2:OFF_BE2 + H2]))

    # --- fc3 + BN + leaky_relu ----------------------------------------------
    h = jnp.dot(h.astype(bf16), w3_ref[...],
                preferred_element_type=f32) + pk_ref[:, OFF_B3:OFF_B3 + H3]
    h = lrelu(bn(h, pk_ref[:, OFF_G3:OFF_G3 + H3], pk_ref[:, OFF_BE3:OFF_BE3 + H3]))

    # --- fc4 + sigmoid: N=1 -> VPU multiply + XLU lane-reduce (all f32) -----
    logit = (jnp.sum(h * pk_ref[:, OFF_W4:OFF_W4 + H3], axis=-1, keepdims=True)
             + pk_ref[:, OFF_B4:OFF_B4 + 1])                                  # (B, 1)
    out = jax.nn.sigmoid(logit)
    # Broadcast across 128 lanes so the writeback is a full (unmasked) vector
    # store; the wrapper slices column 0.
    o_ref[...] = jnp.broadcast_to(out, o_ref.shape).astype(o_ref.dtype)


_FUSED_KERNEL = functools.partial(_disc_fused_kernel, slope=0.2, eps=1e-5)


def _pack_small_params(params):
    parts = [
        params["b1_1"],
        params["b1_2"],
        params["b2"], params["g2"], params["be2"],
        params["b3"], params["g3"], params["be3"],
        params["w1_2"][0], params["w1_2"][1],
        params["w4"][:, 0],
        params["b4"],
        jnp.zeros((PACK_TOTAL - PACK_RAW,), jnp.float32),
    ]
    return jnp.concatenate(parts).reshape(1, PACK_TOTAL)


@jax.jit
def discriminator_forward(params, inp, label):
    B = inp.shape[0]
    bf16 = jnp.bfloat16

    # Big weights as bf16 for the MXU; split fc2 rows to match the virtual
    # concat order [fc1_1_out, fc1_2_out].
    w11 = params["w1_1"].astype(bf16)
    w2t = params["w2"][:H1].astype(bf16)
    w2b = params["w2"][H1:].astype(bf16)
    w3 = params["w3"].astype(bf16)
    packed = _pack_small_params(params)

    vmem = pl.BlockSpec(memory_space=pltpu.MemorySpace.VMEM)
    args = (inp, label, w11, w2t, w2b, w3, packed)

    out_pad = pl.pallas_call(
        _FUSED_KERNEL,
        out_shape=jax.ShapeDtypeStruct((B, OUT_PAD), jnp.float32),
        in_specs=[vmem] * len(args),
        out_specs=vmem,
    )(*args)
    return out_pad[:, :D_OUT]


# ---------------------------------------------------------------------------
# Parameters + pure-JAX references (faithful concat form) for correctness.
# ---------------------------------------------------------------------------
def init_params(key):
    ks = jax.random.split(key, 5)
    std = 0.02
    return {
        "w1_1": jax.random.normal(ks[0], (D_IN, H1), jnp.float32) * std,
        "b1_1": jnp.zeros((H1,), jnp.float32),
        "w1_2": jax.random.normal(ks[1], (D_LBL, H1), jnp.float32) * std,
        "b1_2": jnp.zeros((H1,), jnp.float32),
        "w2":   jax.random.normal(ks[2], (2 * H1, H2), jnp.float32) * std,
        "b2":   jnp.zeros((H2,), jnp.float32),
        "g2":   jnp.ones((H2,), jnp.float32),
        "be2":  jnp.zeros((H2,), jnp.float32),
        "w3":   jax.random.normal(ks[3], (H2, H3), jnp.float32) * std,
        "b3":   jnp.zeros((H3,), jnp.float32),
        "g3":   jnp.ones((H3,), jnp.float32),
        "be3":  jnp.zeros((H3,), jnp.float32),
        "w4":   jax.random.normal(ks[4], (H3, D_OUT), jnp.float32) * std,
        "b4":   jnp.zeros((D_OUT,), jnp.float32),
    }


def _reference_forward(params, inp, label, *, eps=1e-5, slope=0.2, low_precision=False):
    """Faithful concat-form reference. With low_precision=True the big matmuls
    use the same bf16-in / f32-accumulate recipe as the kernel."""
    f32 = jnp.float32

    def mm(a, w):
        if low_precision:
            return jnp.dot(a.astype(jnp.bfloat16), w.astype(jnp.bfloat16),
                           preferred_element_type=f32)
        return jnp.dot(a, w, preferred_element_type=f32)

    def lrelu(v):
        return jnp.maximum(v, slope * v)

    def bn(v, g, b):
        m = jnp.mean(v, axis=0, keepdims=True)
        var = jnp.mean((v - m) ** 2, axis=0, keepdims=True)
        return (v - m) * jax.lax.rsqrt(var + eps) * g + b

    x = lrelu(mm(inp, params["w1_1"]) + params["b1_1"])
    y = lrelu(label @ params["w1_2"] + params["b1_2"])      # K=2 path kept in f32
    h = jnp.concatenate([x, y], axis=1)
    h = lrelu(bn(mm(h, params["w2"]) + params["b2"], params["g2"], params["be2"]))
    h = lrelu(bn(mm(h, params["w3"]) + params["b3"], params["g3"], params["be3"]))
    return jax.nn.sigmoid(h @ params["w4"] + params["b4"])


if __name__ == "__main__":
    key = jax.random.PRNGKey(0)
    kp, ki, kl = jax.random.split(key, 3)

    B = 8
    params = init_params(kp)
    inp = jax.random.normal(ki, (B, D_IN), jnp.float32)        # flattened "image"
    # one-hot gender label, like the original 2-dim label input
    lbl_idx = jax.random.randint(kl, (B,), 0, 2)
    label = jax.nn.one_hot(lbl_idx, D_LBL, dtype=jnp.float32)

    out = jax.block_until_ready(discriminator_forward(params, inp, label))
    ref_lp = jax.block_until_ready(
        _reference_forward(params, inp, label, low_precision=True))
    ref_f32 = jax.block_until_ready(
        _reference_forward(params, inp, label, low_precision=False))

    assert out.shape == (B, D_OUT)
    # Tight check vs a reference with identical bf16 matmul precision.
    assert jnp.allclose(out, ref_lp, atol=1e-2, rtol=1e-2), "mismatch vs bf16 reference"
    # Looser check vs the full-f32 module semantics.
    assert jnp.allclose(out, ref_f32, atol=5e-2, rtol=5e-2), "mismatch vs f32 reference"
    print("KERNEL_OK")
</pallas_src>

<mosaic_0001>
module attributes {stable_mosaic.version = 11 : i64} {
  func.func @_disc_fused_kernel(%arg0: memref<8x384xf32, #tpu.memory_space<vmem>>, %arg1: memref<8x2xf32, #tpu.memory_space<vmem>>, %arg2: memref<384x512xbf16, #tpu.memory_space<vmem>>, %arg3: memref<512x256xbf16, #tpu.memory_space<vmem>>, %arg4: memref<512x256xbf16, #tpu.memory_space<vmem>>, %arg5: memref<256x128xbf16, #tpu.memory_space<vmem>>, %arg6: memref<1x3456xf32, #tpu.memory_space<vmem>>, %arg7: memref<8x128xf32, #tpu.memory_space<vmem>>) attributes {dimension_semantics = [], scalar_prefetch = 0 : i64, scratch_operands = 0 : i64, tpu.core_type = #tpu.core_type<tc>} {
    %c0 = arith.constant 0 : index
    %c0_0 = arith.constant 0 : index
    %0 = vector.load %arg0[%c0, %c0_0] : memref<8x384xf32, #tpu.memory_space<vmem>>, vector<8x384xf32>
    %1 = arith.truncf %0 : vector<8x384xf32> to vector<8x384xbf16>
    %c0_1 = arith.constant 0 : index
    %c0_2 = arith.constant 0 : index
    %2 = vector.load %arg2[%c0_1, %c0_2] : memref<384x512xbf16, #tpu.memory_space<vmem>>, vector<384x512xbf16>
    %cst = arith.constant dense<0.000000e+00> : vector<8x512xf32>
    %3 = tpu.matmul %1, %2, %cst {dimension_numbers = #tpu.dot_dimension_numbers<[1], [0], [0], [1], [0, 0, 1, 1], [], []>} : vector<8x384xbf16>, vector<384x512xbf16>, vector<8x512xf32> -> vector<8x512xf32>
    %c0_3 = arith.constant 0 : index
    %c0_4 = arith.constant 0 : index
    %4 = vector.load %arg6[%c0_3, %c0_4] : memref<1x3456xf32, #tpu.memory_space<vmem>>, vector<1x512xf32>
    %5 = vector.broadcast %4 : vector<1x512xf32> to vector<8x512xf32>
    %6 = arith.addf %3, %5 : vector<8x512xf32>
    %cst_5 = arith.constant 2.000000e-01 : f32
    %7 = vector.broadcast %cst_5 : f32 to vector<8x512xf32>
    %8 = arith.mulf %7, %6 : vector<8x512xf32>
    %9 = arith.maximumf %6, %8 : vector<8x512xf32>
    %c0_6 = arith.constant 0 : index
    %c0_7 = arith.constant 0 : index
    %10 = vector.load %arg1[%c0_6, %c0_7] : memref<8x2xf32, #tpu.memory_space<vmem>>, vector<8x2xf32>
    %11 = vector.extract_strided_slice %10 {offsets = [0, 0], sizes = [8, 1], strides = [1, 1]} : vector<8x2xf32> to vector<8x1xf32>
    %c0_8 = arith.constant 0 : index
    %c2176 = arith.constant 2176 : index
    %12 = vector.load %arg6[%c0_8, %c2176] : memref<1x3456xf32, #tpu.memory_space<vmem>>, vector<1x512xf32>
    %13 = vector.broadcast %11 : vector<8x1xf32> to vector<8x512xf32>
    %14 = vector.broadcast %12 : vector<1x512xf32> to vector<8x512xf32>
    %15 = arith.mulf %13, %14 : vector<8x512xf32>
    %16 = vector.extract_strided_slice %10 {offsets = [0, 1], sizes = [8, 1], strides = [1, 1]} : vector<8x2xf32> to vector<8x1xf32>
    %c0_9 = arith.constant 0 : index
    %c2688 = arith.constant 2688 : index
    %17 = vector.load %arg6[%c0_9, %c2688] : memref<1x3456xf32, #tpu.memory_space<vmem>>, vector<1x512xf32>
    %18 = vector.broadcast %16 : vector<8x1xf32> to vector<8x512xf32>
    %19 = vector.broadcast %17 : vector<1x512xf32> to vector<8x512xf32>
    %20 = arith.mulf %18, %19 : vector<8x512xf32>
    %21 = arith.addf %15, %20 : vector<8x512xf32>
    %c0_10 = arith.constant 0 : index
    %c512 = arith.constant 512 : index
    %22 = vector.load %arg6[%c0_10, %c512] : memref<1x3456xf32, #tpu.memory_space<vmem>>, vector<1x512xf32>
    %23 = vector.broadcast %22 : vector<1x512xf32> to vector<8x512xf32>
    %24 = arith.addf %21, %23 : vector<8x512xf32>
    %cst_11 = arith.constant 2.000000e-01 : f32
    %25 = vector.broadcast %cst_11 : f32 to vector<8x512xf32>
    %26 = arith.mulf %25, %24 : vector<8x512xf32>
    %27 = arith.maximumf %24, %26 : vector<8x512xf32>
    %28 = arith.truncf %9 : vector<8x512xf32> to vector<8x512xbf16>
    %c0_12 = arith.constant 0 : index
    %c0_13 = arith.constant 0 : index
    %29 = vector.load %arg3[%c0_12, %c0_13] : memref<512x256xbf16, #tpu.memory_space<vmem>>, vector<512x256xbf16>
    %cst_14 = arith.constant dense<0.000000e+00> : vector<8x256xf32>
    %30 = tpu.matmul %28, %29, %cst_14 {dimension_numbers = #tpu.dot_dimension_numbers<[1], [0], [0], [1], [0, 0, 1, 1], [], []>} : vector<8x512xbf16>, vector<512x256xbf16>, vector<8x256xf32> -> vector<8x256xf32>
    %31 = arith.truncf %27 : vector<8x512xf32> to vector<8x512xbf16>
    %c0_15 = arith.constant 0 : index
    %c0_16 = arith.constant 0 : index
    %32 = vector.load %arg4[%c0_15, %c0_16] : memref<512x256xbf16, #tpu.memory_space<vmem>>, vector<512x256xbf16>
    %cst_17 = arith.constant dense<0.000000e+00> : vector<8x256xf32>
    %33 = tpu.matmul %31, %32, %cst_17 {dimension_numbers = #tpu.dot_dimension_numbers<[1], [0], [0], [1], [0, 0, 1, 1], [], []>} : vector<8x512xbf16>, vector<512x256xbf16>, vector<8x256xf32> -> vector<8x256xf32>
    %34 = arith.addf %30, %33 : vector<8x256xf32>
    %c0_18 = arith.constant 0 : index
    %c1024 = arith.constant 1024 : index
    %35 = vector.load %arg6[%c0_18, %c1024] : memref<1x3456xf32, #tpu.memory_space<vmem>>, vector<1x256xf32>
    %36 = vector.broadcast %35 : vector<1x256xf32> to vector<8x256xf32>
    %37 = arith.addf %34, %36 : vector<8x256xf32>
    %c0_19 = arith.constant 0 : index
    %c1280 = arith.constant 1280 : index
    %38 = vector.load %arg6[%c0_19, %c1280] : memref<1x3456xf32, #tpu.memory_space<vmem>>, vector<1x256xf32>
    %c0_20 = arith.constant 0 : index
    %c1536 = arith.constant 1536 : index
    %39 = vector.load %arg6[%c0_20, %c1536] : memref<1x3456xf32, #tpu.memory_space<vmem>>, vector<1x256xf32>
    %cst_21 = arith.constant dense<0.000000e+00> : vector<256xf32>
    %40 = vector.multi_reduction <add>, %37, %cst_21 [0] : vector<8x256xf32> to vector<256xf32>
    %41 = vector.shape_cast %40 : vector<256xf32> to vector<1x256xf32>
    %cst_22 = arith.constant 8.000000e+00 : f32
    %42 = vector.broadcast %cst_22 : f32 to vector<1x256xf32>
    %43 = arith.divf %41, %42 : vector<1x256xf32>
    %44 = vector.broadcast %43 : vector<1x256xf32> to vector<8x256xf32>
    %45 = arith.subf %37, %44 : vector<8x256xf32>
    %46 = arith.mulf %45, %45 : vector<8x256xf32>
    %cst_23 = arith.constant dense<0.000000e+00> : vector<256xf32>
    %47 = vector.multi_reduction <add>, %46, %cst_23 [0] : vector<8x256xf32> to vector<256xf32>
    %48 = vector.shape_cast %47 : vector<256xf32> to vector<1x256xf32>
    %cst_24 = arith.constant 8.000000e+00 : f32
    %49 = vector.broadcast %cst_24 : f32 to vector<1x256xf32>
    %50 = arith.divf %48, %49 : vector<1x256xf32>
    %51 = vector.broadcast %43 : vector<1x256xf32> to vector<8x256xf32>
    %52 = arith.subf %37, %51 : vector<8x256xf32>
    %cst_25 = arith.constant 9.99999974E-6 : f32
    %53 = vector.broadcast %cst_25 : f32 to vector<1x256xf32>
    %54 = arith.addf %50, %53 : vector<1x256xf32>
    %55 = math.rsqrt %54 : vector<1x256xf32>
    %56 = vector.broadcast %55 : vector<1x256xf32> to vector<8x256xf32>
    %57 = arith.mulf %52, %56 : vector<8x256xf32>
    %58 = vector.broadcast %38 : vector<1x256xf32> to vector<8x256xf32>
    %59 = arith.mulf %57, %58 : vector<8x256xf32>
    %60 = vector.broadcast %39 : vector<1x256xf32> to vector<8x256xf32>
    %61 = arith.addf %59, %60 : vector<8x256xf32>
    %cst_26 = arith.constant 2.000000e-01 : f32
    %62 = vector.broadcast %cst_26 : f32 to vector<8x256xf32>
    %63 = arith.mulf %62, %61 : vector<8x256xf32>
    %64 = arith.maximumf %61, %63 : vector<8x256xf32>
    %65 = arith.truncf %64 : vector<8x256xf32> to vector<8x256xbf16>
    %c0_27 = arith.constant 0 : index
    %c0_28 = arith.constant 0 : index
    %66 = vector.load %arg5[%c0_27, %c0_28] : memref<256x128xbf16, #tpu.memory_space<vmem>>, vector<256x128xbf16>
    %cst_29 = arith.constant dense<0.000000e+00> : vector<8x128xf32>
    %67 = tpu.matmul %65, %66, %cst_29 {dimension_numbers = #tpu.dot_dimension_numbers<[1], [0], [0], [1], [0, 0, 1, 1], [], []>} : vector<8x256xbf16>, vector<256x128xbf16>, vector<8x128xf32> -> vector<8x128xf32>
    %c0_30 = arith.constant 0 : index
    %c1792 = arith.constant 1792 : index
    %68 = vector.load %arg6[%c0_30, %c1792] : memref<1x3456xf32, #tpu.memory_space<vmem>>, vector<1x128xf32>
    %69 = vector.broadcast %68 : vector<1x128xf32> to vector<8x128xf32>
    %70 = arith.addf %67, %69 : vector<8x128xf32>
    %c0_31 = arith.constant 0 : index
    %c1920 = arith.constant 1920 : index
    %71 = vector.load %arg6[%c0_31, %c1920] : memref<1x3456xf32, #tpu.memory_space<vmem>>, vector<1x128xf32>
    %c0_32 = arith.constant 0 : index
    %c2048 = arith.constant 2048 : index
    %72 = vector.load %arg6[%c0_32, %c2048] : memref<1x3456xf32, #tpu.memory_space<vmem>>, vector<1x128xf32>
    %cst_33 = arith.constant dense<0.000000e+00> : vector<128xf32>
    %73 = vector.multi_reduction <add>, %70, %cst_33 [0] : vector<8x128xf32> to vector<128xf32>
    %74 = vector.shape_cast %73 : vector<128xf32> to vector<1x128xf32>
    %cst_34 = arith.constant 8.000000e+00 : f32
    %75 = vector.broadcast %cst_34 : f32 to vector<1x128xf32>
    %76 = arith.divf %74, %75 : vector<1x128xf32>
    %77 = vector.broadcast %76 : vector<1x128xf32> to vector<8x128xf32>
    %78 = arith.subf %70, %77 : vector<8x128xf32>
    %79 = arith.mulf %78, %78 : vector<8x128xf32>
    %cst_35 = arith.constant dense<0.000000e+00> : vector<128xf32>
    %80 = vector.multi_reduction <add>, %79, %cst_35 [0] : vector<8x128xf32> to vector<128xf32>
    %81 = vector.shape_cast %80 : vector<128xf32> to vector<1x128xf32>
    %cst_36 = arith.constant 8.000000e+00 : f32
    %82 = vector.broadcast %cst_36 : f32 to vector<1x128xf32>
    %83 = arith.divf %81, %82 : vector<1x128xf32>
    %84 = vector.broadcast %76 : vector<1x128xf32> to vector<8x128xf32>
    %85 = arith.subf %70, %84 : vector<8x128xf32>
    %cst_37 = arith.constant 9.99999974E-6 : f32
    %86 = vector.broadcast %cst_37 : f32 to vector<1x128xf32>
    %87 = arith.addf %83, %86 : vector<1x128xf32>
    %88 = math.rsqrt %87 : vector<1x128xf32>
    %89 = vector.broadcast %88 : vector<1x128xf32> to vector<8x128xf32>
    %90 = arith.mulf %85, %89 : vector<8x128xf32>
    %91 = vector.broadcast %71 : vector<1x128xf32> to vector<8x128xf32>
    %92 = arith.mulf %90, %91 : vector<8x128xf32>
    %93 = vector.broadcast %72 : vector<1x128xf32> to vector<8x128xf32>
    %94 = arith.addf %92, %93 : vector<8x128xf32>
    %cst_38 = arith.constant 2.000000e-01 : f32
    %95 = vector.broadcast %cst_38 : f32 to vector<8x128xf32>
    %96 = arith.mulf %95, %94 : vector<8x128xf32>
    %97 = arith.maximumf %94, %96 : vector<8x128xf32>
    %c0_39 = arith.constant 0 : index
    %c3200 = arith.constant 3200 : index
    %98 = vector.load %arg6[%c0_39, %c3200] : memref<1x3456xf32, #tpu.memory_space<vmem>>, vector<1x128xf32>
    %99 = vector.broadcast %98 : vector<1x128xf32> to vector<8x128xf32>
    %100 = arith.mulf %97, %99 : vector<8x128xf32>
    %cst_40 = arith.constant dense<0.000000e+00> : vector<8xf32>
    %101 = vector.multi_reduction <add>, %100, %cst_40 [1] : vector<8x128xf32> to vector<8xf32>
    %102 = vector.shape_cast %101 : vector<8xf32> to vector<8x1xf32>
    %c0_41 = arith.constant 0 : index
    %c3328 = arith.constant 3328 : index
    %103 = vector.load %arg6[%c0_41, %c3328] : memref<1x3456xf32, #tpu.memory_space<vmem>>, vector<1x1xf32>
    %104 = vector.broadcast %103 : vector<1x1xf32> to vector<8x1xf32>
    %105 = arith.addf %102, %104 : vector<8x1xf32>
    %106 = arith.negf %105 : vector<8x1xf32>
    %107 = math.exp %106 : vector<8x1xf32>
    %cst_42 = arith.constant 1.000000e+00 : f32
    %108 = vector.broadcast %cst_42 : f32 to vector<8x1xf32>
    %109 = arith.addf %108, %107 : vector<8x1xf32>
    %110 = arith.divf %108, %109 : vector<8x1xf32>
    %111 = vector.shape_cast %110 : vector<8x1xf32> to vector<8x1xf32>
    %112 = vector.broadcast %111 : vector<8x1xf32> to vector<8x128xf32>
    %c0_43 = arith.constant 0 : index
    %c0_44 = arith.constant 0 : index
    %113 = vector.load %arg7[%c0_43, %c0_44] : memref<8x128xf32, #tpu.memory_space<vmem>>, vector<8x128xf32>
    tpu.vector_store %arg7[%c0_43, %c0_44], %112 {strides = array<i32>} : memref<8x128xf32, #tpu.memory_space<vmem>>, vector<8x128xf32>,
    return
  }
}

</mosaic_0001>

<bundles_post_ra>
// kernel: discriminator_forward.1
= control target key start
LH: loop header
LB: loop body
LE: loop exit
PB: predicated region body
PF: predicated region fallthrough
CT: control target
= control target key end

     0   :  { %v2824_v1 = vmov 0   ;;  %s3672_s2 = inlined_call_operand.vmem [shape: bf16[384,512], index: 2, kind: input, shape index: {}]   ;;  %s3673_s0 = inlined_call_operand.vmem [shape: f32[8,384], index: 0, kind: input, shape index: {}]   ;;  %s3674_s1 = inlined_call_operand.vmem [shape: f32[8,2], index: 1, kind: input, shape index: {}]   ;;  %s3675_s4 = inlined_call_operand.vmem [shape: bf16[512,256], index: 4, kind: input, shape index: {}]   ;;  %s3676_s3 = inlined_call_operand.vmem [shape: bf16[512,256], index: 3, kind: input, shape index: {}]   ;;  %s3677_s6 = inlined_call_operand.vmem [shape: f32[1,3456], index: 6, kind: input, shape index: {}]   ;;  %s3678_s5 = inlined_call_operand.vmem [shape: bf16[256,128], index: 5, kind: input, shape index: {}]   ;;  %s3679_s7 = inlined_call_operand.vmem [shape: f32[8,128], index: 7, kind: output, shape index: {}]  }
   0x1   :  { %v2462_v0 = vld [vmem:[%s3672_s2 + $0x4] ss:$16 sps:$4 sm:$0xff]   ;;  %2458 = vset.pattern.permute.xlu0 %v2824_v1  ;;  %2460 = vset.pattern.permute.xlu1 %v2824_v1  ;;  %v2464_v2 = vld [vmem:[%s3672_s2 + $0xc] ss:$16 sps:$4 sm:$0xff]   ;;  %v2466_v3 = vld [vmem:[%s3672_s2] ss:$16 sps:$4 sm:$0xff]  }
   0x2   :  { %631 = vmatprep.subr.bf16.mxu0 %v2462_v0  ;;  %v2467_v4 = vld [vmem:[%s3672_s2 + $0x8] ss:$16 sps:$4 sm:$0xff]   ;;  %713 = vmatprep.subr.bf16.mxu1 %v2464_v2  ;;  %v2468_v5 = vld [vmem:[%s3672_s2 + $0x24] ss:$16 sps:$4 sm:$0xff]   ;;  %v2470_v6 = vld [vmem:[%s3672_s2 + $0x2c] ss:$16 sps:$4 sm:$0xff]  }
   0x3   :  { %632 = vmatpush1.bf16.msra.mxu0 %v2466_v3  ;;  %714 = vmatpush1.bf16.msra.mxu1 %v2467_v4  ;;  %v2472_v7 = vld [vmem:[%s3672_s2 + $0x20] ss:$16 sps:$4 sm:$0xff]   ;;  %v2473_v8 = vld [vmem:[%s3672_s2 + $0x28] ss:$16 sps:$4 sm:$0xff]   ;;  %v2474_v9 = vld [vmem:[%s3672_s2 + $0x44] ss:$16 sps:$4 sm:$0xff]  }
   0x4   :  { %633 = vmatprep.subr.bf16.mxu0 %v2468_v5  ;;  %715 = vmatprep.subr.bf16.mxu1 %v2470_v6  ;;  %v2476_v10 = vld [vmem:[%s3672_s2 + $0x4c] ss:$16 sps:$4 sm:$0xff]   ;;  %v2478_v11 = vld [vmem:[%s3672_s2 + $0x40] ss:$16 sps:$4 sm:$0xff]   ;;  %v2479_v12 = vld [vmem:[%s3672_s2 + $0x48] ss:$16 sps:$4 sm:$0xff]  }
   0x5   :  { %v2480_v13 = vld [vmem:[%s3672_s2 + $0x64] ss:$16 sps:$4 sm:$0xff]   ;;  %v2482_v14 = vld [vmem:[%s3672_s2 + $0x6c] ss:$16 sps:$4 sm:$0xff]   ;;  %v2484_v15 = vld [vmem:[%s3672_s2 + $0x60] ss:$16 sps:$4 sm:$0xff]  }
   0x6   :  { %v2485_v16 = vld [vmem:[%s3672_s2 + $0x68] ss:$16 sps:$4 sm:$0xff]   ;;  %v2486_v17 = vld [vmem:[%s3672_s2 + $0x84] ss:$16 sps:$4 sm:$0xff]   ;;  %v2488_v18 = vld [vmem:[%s3672_s2 + $0x8c] ss:$16 sps:$4 sm:$0xff]  }
   0x7   :  { %634 = vmatpush1.bf16.msra.mxu0 %v2472_v7  ;;  %716 = vmatpush1.bf16.msra.mxu1 %v2473_v8  ;;  %v2490_v19 = vld [vmem:[%s3672_s2 + $0x80] ss:$16 sps:$4 sm:$0xff]   ;;  %v2491_v20 = vld [vmem:[%s3672_s2 + $0x88] ss:$16 sps:$4 sm:$0xff]   ;;  %v2492_v21 = vld [vmem:[%s3672_s2 + $0xa4] ss:$16 sps:$4 sm:$0xff]  }
   0x8   :  { %635 = vmatprep.subr.bf16.mxu0 %v2474_v9  ;;  %717 = vmatprep.subr.bf16.mxu1 %v2476_v10  ;;  %v2494_v22 = vld [vmem:[%s3672_s2 + $0xac] ss:$16 sps:$4 sm:$0xff]   ;;  %v2496_v23 = vld [vmem:[%s3672_s2 + $0xa0] ss:$16 sps:$4 sm:$0xff]   ;;  %v2497_v24 = vld [vmem:[%s3672_s2 + $0xa8] ss:$16 sps:$4 sm:$0xff]  }
   0x9   :  { %v2498_v25 = vld [vmem:[%s3672_s2 + $0xc4] ss:$16 sps:$4 sm:$0xff]   ;;  %v2500_v26 = vld [vmem:[%s3672_s2 + $0xcc] ss:$16 sps:$4 sm:$0xff]   ;;  %v2502_v27 = vld [vmem:[%s3672_s2 + $0xc0] ss:$16 sps:$4 sm:$0xff]  }
   0xa   :  { %v2503_v28 = vld [vmem:[%s3672_s2 + $0xc8] ss:$16 sps:$4 sm:$0xff]   ;;  %v2504_v29 = vld [vmem:[%s3672_s2 + $0xe4] ss:$16 sps:$4 sm:$0xff]   ;;  %v2506_v30 = vld [vmem:[%s3672_s2 + $0xec] ss:$16 sps:$4 sm:$0xff]  }
   0xb   :  { %636 = vmatpush1.bf16.msra.mxu0 %v2478_v11  ;;  %718 = vmatpush1.bf16.msra.mxu1 %v2479_v12  ;;  %v2508_v31 = vld [vmem:[%s3672_s2 + $0xe0] ss:$16 sps:$4 sm:$0xff]   ;;  %v2509_v32 = vld [vmem:[%s3672_s2 + $0xe8] ss:$16 sps:$4 sm:$0xff]   ;;  %v2510_v33 = vld [vmem:[%s3672_s2 + $0x104] ss:$16 sps:$4 sm:$0xff]  }
   0xc   :  { %637 = vmatprep.subr.bf16.mxu0 %v2480_v13  ;;  %719 = vmatprep.subr.bf16.mxu1 %v2482_v14  ;;  %v2512_v34 = vld [vmem:[%s3672_s2 + $0x10c] ss:$16 sps:$4 sm:$0xff]   ;;  %v2514_v35 = vld [vmem:[%s3672_s2 + $0x100] ss:$16 sps:$4 sm:$0xff]   ;;  %v2515_v36 = vld [vmem:[%s3672_s2 + $0x108] ss:$16 sps:$4 sm:$0xff]  }
   0xd   :  { %v2516_v37 = vld [vmem:[%s3672_s2 + $0x124] ss:$16 sps:$4 sm:$0xff]   ;;  %v2518_v38 = vld [vmem:[%s3672_s2 + $0x12c] ss:$16 sps:$4 sm:$0xff]   ;;  %v2520_v39 = vld [vmem:[%s3672_s2 + $0x120] ss:$16 sps:$4 sm:$0xff]  }
   0xe   :  { %v2521_v40 = vld [vmem:[%s3672_s2 + $0x128] ss:$16 sps:$4 sm:$0xff]   ;;  %v2522_v41 = vld [vmem:[%s3672_s2 + $0x144] ss:$16 sps:$4 sm:$0xff]   ;;  %v2524_v42 = vld [vmem:[%s3672_s2 + $0x14c] ss:$16 sps:$4 sm:$0xff]  }
   0xf   :  { %638 = vmatpush1.bf16.msra.mxu0 %v2484_v15  ;;  %720 = vmatpush1.bf16.msra.mxu1 %v2485_v16  ;;  %v2526_v43 = vld [vmem:[%s3672_s2 + $0x140] ss:$16 sps:$4 sm:$0xff]   ;;  %v2527_v44 = vld [vmem:[%s3672_s2 + $0x148] ss:$16 sps:$4 sm:$0xff]   ;;  %v2528_v45 = vld [vmem:[%s3672_s2 + $0x164] ss:$16 sps:$4 sm:$0xff]  }
  0x10   :  { %639 = vmatprep.subr.bf16.mxu0 %v2486_v17  ;;  %721 = vmatprep.subr.bf16.mxu1 %v2488_v18  ;;  %v2530_v46 = vld [vmem:[%s3672_s2 + $0x16c] ss:$16 sps:$4 sm:$0xff]   ;;  %v2532_v49 = vld [vmem:[%s3672_s2 + $0x160] ss:$16 sps:$4 sm:$0xff]   ;;  %v2533_v50 = vld [vmem:[%s3672_s2 + $0x168] ss:$16 sps:$4 sm:$0xff]  }
  0x11   :  { %v28_v47 = vld [vmem:[%s3673_s0 + $0x8] sm:$0xff]  ;;  %v2534_v51 = vld [vmem:[%s3672_s2 + $0x184] ss:$16 sps:$4 sm:$0xff]   ;;  %v2538_v53 = vld [vmem:[%s3672_s2 + $0x180] ss:$16 sps:$4 sm:$0xff]  }
  0x12   :  { %v31_v48 = vpack.c.bf16 %v28_v47, %v28_v47  ;;  %v2536_v52 = vld [vmem:[%s3672_s2 + $0x18c] ss:$16 sps:$4 sm:$0xff]   ;;  %v2539_v54 = vld [vmem:[%s3672_s2 + $0x188] ss:$16 sps:$4 sm:$0xff]   ;;  %v2540_v55 = vld [vmem:[%s3672_s2 + $0x1a4] ss:$16 sps:$4 sm:$0xff]  }
  0x13   :  { %640 = vmatpush1.bf16.msra.mxu0 %v2490_v19  ;;  %722 = vmatpush1.bf16.msra.mxu1 %v2491_v20  ;;  %v2542_v56 = vld [vmem:[%s3672_s2 + $0x1ac] ss:$16 sps:$4 sm:$0xff]   ;;  %v2544_v57 = vld [vmem:[%s3672_s2 + $0x1a0] ss:$16 sps:$4 sm:$0xff]   ;;  %v2545_v58 = vld [vmem:[%s3672_s2 + $0x1a8] ss:$16 sps:$4 sm:$0xff]  }
  0x14   :  { %641 = vmatprep.subr.bf16.mxu0 %v2492_v21  ;;  %723 = vmatprep.subr.bf16.mxu1 %v2494_v22  ;;  %v2546_v59 = vld [vmem:[%s3672_s2 + $0x1c4] ss:$16 sps:$4 sm:$0xff]   ;;  %v2548_v60 = vld [vmem:[%s3672_s2 + $0x1cc] ss:$16 sps:$4 sm:$0xff]   ;;  %v2550_v61 = vld [vmem:[%s3672_s2 + $0x1c0] ss:$16 sps:$4 sm:$0xff]  }
  0x15   :  { %663 = vmatprep.mubr.bf16.mxu0 %v31_v48  ;;  %745 = vmatprep.mubr.bf16.mxu1 %v31_v48  ;;  %v2551_v62 = vld [vmem:[%s3672_s2 + $0x1c8] ss:$16 sps:$4 sm:$0xff]   ;;  %v2552_v63 = vld [vmem:[%s3672_s2 + $0x1e4] ss:$16 sps:$4 sm:$0xff]   ;;  %v2554_v0 = vld [vmem:[%s3672_s2 + $0x1ec] ss:$16 sps:$4 sm:$0xff]  }
  0x16   :  { %v2556_v2 = vld [vmem:[%s3672_s2 + $0x1e0] ss:$16 sps:$4 sm:$0xff]   ;;  %v2557_v3 = vld [vmem:[%s3672_s2 + $0x1e8] ss:$16 sps:$4 sm:$0xff]   ;;  %v2560_v4 = vld [vmem:[%s3672_s2 + $0x204] ss:$16 sps:$4 sm:$0xff]  }
  0x17   :  { %642 = vmatpush1.bf16.msra.mxu0 %v2496_v23  ;;  %724 = vmatpush1.bf16.msra.mxu1 %v2497_v24  ;;  %v27_v5 = vld [vmem:[%s3673_s0] sm:$0xff]  ;;  %v2563_v6 = vld [vmem:[%s3672_s2 + $0x20c] ss:$16 sps:$4 sm:$0xff]   ;;  %v2561_v8 = vld [vmem:[%s3672_s2 + $0x208] ss:$16 sps:$4 sm:$0xff]   ;;  %v2825_v19 = vmov 1  }
  0x18   :  { %643 = vmatprep.subr.bf16.mxu0 %v2498_v25  ;;  %725 = vmatprep.subr.bf16.mxu1 %v2500_v26  ;;  %v2558_v7 = vld [vmem:[%s3672_s2 + $0x200] ss:$16 sps:$4 sm:$0xff]   ;;  %v30_v9 = vpack.c.bf16 %v27_v5, %v27_v5  ;;  %v2566_v10 = vld [vmem:[%s3672_s2 + $0x224] ss:$16 sps:$4 sm:$0xff]   ;;  %v2569_v11 = vld [vmem:[%s3672_s2 + $0x22c] ss:$16 sps:$4 sm:$0xff]  }
  0x19   :  { %v803_v12 = vld [vmem:[%s3674_s1] sm:$0xff]  ;;  %v2567_v14 = vld [vmem:[%s3672_s2 + $0x228] ss:$16 sps:$4 sm:$0xff]   ;;  %v2575_v16 = vld [vmem:[%s3672_s2 + $0x24c] ss:$16 sps:$4 sm:$0xff]  }
  0x1a   :  { %807 = vperm.xlu0 %2458, %v803_v12   ;;  %v2564_v13 = vld [vmem:[%s3672_s2 + $0x220] ss:$16 sps:$4 sm:$0xff]   ;;  %v2572_v15 = vld [vmem:[%s3672_s2 + $0x244] ss:$16 sps:$4 sm:$0xff]   ;;  %v2573_v18 = vld [vmem:[%s3672_s2 + $0x248] ss:$16 sps:$4 sm:$0xff]  }
  0x1b   :  { %644 = vmatpush1.bf16.msra.mxu0 %v2502_v27  ;;  %726 = vmatpush1.bf16.msra.mxu1 %v2503_v28  ;;  %v2570_v17 = vld [vmem:[%s3672_s2 + $0x240] ss:$16 sps:$4 sm:$0xff]   ;;  %v2578_v20 = vld [vmem:[%s3672_s2 + $0x264] ss:$16 sps:$4 sm:$0xff]   ;;  %v2581_v21 = vld [vmem:[%s3672_s2 + $0x26c] ss:$16 sps:$4 sm:$0xff]  }
  0x1c   :  { %645 = vmatprep.subr.bf16.mxu0 %v2504_v29  ;;  %727 = vmatprep.subr.bf16.mxu1 %v2506_v30  ;;  %v2576_v22 = vld [vmem:[%s3672_s2 + $0x260] ss:$16 sps:$4 sm:$0xff]   ;;  %v2579_v23 = vld [vmem:[%s3672_s2 + $0x268] ss:$16 sps:$4 sm:$0xff]   ;;  %v2584_v24 = vld [vmem:[%s3672_s2 + $0x284] ss:$16 sps:$4 sm:$0xff]  }
  0x1d   :  { %v2587_v25 = vld [vmem:[%s3672_s2 + $0x28c] ss:$16 sps:$4 sm:$0xff]   ;;  %v2582_v26 = vld [vmem:[%s3672_s2 + $0x280] ss:$16 sps:$4 sm:$0xff]   ;;  %v2585_v27 = vld [vmem:[%s3672_s2 + $0x288] ss:$16 sps:$4 sm:$0xff]  }
  0x1e   :  { %2459 = vset.pattern.permute.xlu0 %v2825_v19  ;;  %v2590_v28 = vld [vmem:[%s3672_s2 + $0x2a4] ss:$16 sps:$4 sm:$0xff]   ;;  %v2588_v29 = vld [vmem:[%s3672_s2 + $0x2a0] ss:$16 sps:$4 sm:$0xff]   ;;  %v2591_v30 = vld [vmem:[%s3672_s2 + $0x2a8] ss:$16 sps:$4 sm:$0xff]  }
  0x1f   :  { %646 = vmatpush1.bf16.msra.mxu0 %v2508_v31  ;;  %728 = vmatpush1.bf16.msra.mxu1 %v2509_v32  ;;  %v2596_v31 = vld [vmem:[%s3672_s2 + $0x2c4] ss:$16 sps:$4 sm:$0xff]   ;;  %v2599_v32 = vld [vmem:[%s3672_s2 + $0x2cc] ss:$16 sps:$4 sm:$0xff]   ;;  %v2612_v47 = vld [vmem:[%s3675_s4 + $0x10] ss:$8 sps:$4 sm:$0xff]  }
  0x20   :  { %647 = vmatprep.subr.bf16.mxu0 %v2510_v33  ;;  %729 = vmatprep.subr.bf16.mxu1 %v2512_v34  ;;  %v2594_v33 = vld [vmem:[%s3672_s2 + $0x2c0] ss:$16 sps:$4 sm:$0xff]   ;;  %v2597_v34 = vld [vmem:[%s3672_s2 + $0x2c8] ss:$16 sps:$4 sm:$0xff]   ;;  %v2671_v19 = vld [vmem:[%s3675_s4 + $0x1a4] ss:$8 sps:$4 sm:$0xff]  }
  0x21   :  { %837 = vperm.xlu0 %2459, %v803_v12   ;;  %v2615_v48 = vld [vmem:[%s3675_s4 + $0x110] ss:$8 sps:$4 sm:$0xff]   ;;  %v2645_v5 = vld [vmem:[%s3675_s4 + $0x160] ss:$8 sps:$4 sm:$0xff]  }
  0x22   :  { %v2654_v12 = vld [vmem:[%s3675_s4 + $0x80] ss:$8 sps:$4 sm:$0xff]  }
  0x23   :  { %648 = vmatpush1.bf16.msra.mxu0 %v2514_v35  ;;  %730 = vmatpush1.bf16.msra.mxu1 %v2515_v36  ;;  %v2602_v35 = vld [vmem:[%s3672_s2 + $0x2e4] ss:$16 sps:$4 sm:$0xff]   ;;  %v2605_v36 = vld [vmem:[%s3672_s2 + $0x2ec] ss:$16 sps:$4 sm:$0xff]  }
  0x24   :  { %649 = vmatprep.subr.bf16.mxu0 %v2516_v37  ;;  %731 = vmatprep.subr.bf16.mxu1 %v2518_v38  ;;  %v29_v37 = vld [vmem:[%s3673_s0 + $0x10] sm:$0xff] }
  0x25   :  { %2461 = vset.pattern.permute.xlu0 %v2824_v1  ;;  %v2600_v38 = vld [vmem:[%s3672_s2 + $0x2e0] ss:$16 sps:$4 sm:$0xff]  }
  0x27   :  { %650 = vmatpush1.bf16.msra.mxu0 %v2520_v39  ;;  %732 = vmatpush1.bf16.msra.mxu1 %v2521_v40  ;;  %v2603_v39 = vld [vmem:[%s3672_s2 + $0x2e8] ss:$16 sps:$4 sm:$0xff]   ;;  %v2608_v40 = vld [vmem:[%s3675_s4 + $0x4] ss:$8 sps:$4 sm:$0xff]  }
  0x28   :  { %651 = vmatprep.subr.bf16.mxu0 %v2522_v41  ;;  %733 = vmatprep.subr.bf16.mxu1 %v2524_v42  ;;  %v2611_v41 = vld [vmem:[%s3675_s4 + $0x104] ss:$8 sps:$4 sm:$0xff]   ;;  %v32_v42 = vpack.c.bf16 %v29_v37, %v29_v37  ;;  %v2698_v37 = vld [vmem:[%s3675_s4 + $0xf4] ss:$8 sps:$4 sm:$0xff]  }
  0x2b   :  { %652 = vmatpush1.bf16.msra.mxu0 %v2526_v43  ;;  %734 = vmatpush1.bf16.msra.mxu1 %v2527_v44  ;;  %v2606_v43 = vld [vmem:[%s3675_s4] ss:$8 sps:$4 sm:$0xff]  }
  0x2c   :  { %653 = vmatprep.subr.bf16.mxu0 %v2528_v45  ;;  %735 = vmatprep.subr.bf16.mxu1 %v2530_v46  ;;  %v2609_v44 = vld [vmem:[%s3675_s4 + $0x100] ss:$8 sps:$4 sm:$0xff]   ;;  %v2614_v45 = vld [vmem:[%s3675_s4 + $0x14] ss:$8 sps:$4 sm:$0xff]  }
  0x2d   :  { %v2617_v46 = vld [vmem:[%s3675_s4 + $0x114] ss:$8 sps:$4 sm:$0xff]  }
  0x2f   :  { %654 = vmatpush1.bf16.msra.mxu0 %v2532_v49  ;;  %736 = vmatpush1.bf16.msra.mxu1 %v2533_v50  ;;  %v2620_v49 = vld [vmem:[%s3675_s4 + $0x24] ss:$8 sps:$4 sm:$0xff]  }
  0x30   :  { %655 = vmatprep.subr.bf16.mxu0 %v2534_v51  ;;  %737 = vmatprep.subr.bf16.mxu1 %v2536_v52  ;;  %v2623_v50 = vld [vmem:[%s3675_s4 + $0x124] ss:$8 sps:$4 sm:$0xff]   ;;  %v2618_v51 = vld [vmem:[%s3675_s4 + $0x20] ss:$8 sps:$4 sm:$0xff]  }
  0x31   :  { %v2621_v52 = vld [vmem:[%s3675_s4 + $0x120] ss:$8 sps:$4 sm:$0xff]  }
  0x33   :  { %656 = vmatpush1.bf16.msra.mxu0 %v2538_v53  ;;  %738 = vmatpush1.bf16.msra.mxu1 %v2539_v54  ;;  %v2626_v53 = vld [vmem:[%s3675_s4 + $0x34] ss:$8 sps:$4 sm:$0xff]  }
  0x34   :  { %657 = vmatprep.subr.bf16.mxu0 %v2540_v55  ;;  %739 = vmatprep.subr.bf16.mxu1 %v2542_v56  ;;  %v2629_v54 = vld [vmem:[%s3675_s4 + $0x134] ss:$8 sps:$4 sm:$0xff]   ;;  %v2624_v55 = vld [vmem:[%s3675_s4 + $0x30] ss:$8 sps:$4 sm:$0xff]  }
  0x35   :  { %v2627_v56 = vld [vmem:[%s3675_s4 + $0x130] ss:$8 sps:$4 sm:$0xff]  }
  0x37   :  { %658 = vmatpush1.bf16.msra.mxu0 %v2544_v57  ;;  %740 = vmatpush1.bf16.msra.mxu1 %v2545_v58  ;;  %v2632_v57 = vld [vmem:[%s3675_s4 + $0x44] ss:$8 sps:$4 sm:$0xff]  }
  0x38   :  { %659 = vmatprep.subr.bf16.mxu0 %v2546_v59  ;;  %741 = vmatprep.subr.bf16.mxu1 %v2548_v60  ;;  %v2635_v58 = vld [vmem:[%s3675_s4 + $0x144] ss:$8 sps:$4 sm:$0xff]   ;;  %v2630_v59 = vld [vmem:[%s3675_s4 + $0x40] ss:$8 sps:$4 sm:$0xff]  }
  0x39   :  { %v2633_v60 = vld [vmem:[%s3675_s4 + $0x140] ss:$8 sps:$4 sm:$0xff]  }
  0x3b   :  { %660 = vmatpush1.bf16.msra.mxu0 %v2550_v61  ;;  %742 = vmatpush1.bf16.msra.mxu1 %v2551_v62  ;;  %v2638_v61 = vld [vmem:[%s3675_s4 + $0x54] ss:$8 sps:$4 sm:$0xff]  }
  0x3c   :  { %661 = vmatprep.subr.bf16.mxu0 %v2552_v63  ;;  %743 = vmatprep.subr.bf16.mxu1 %v2554_v0  ;;  %v2641_v62 = vld [vmem:[%s3675_s4 + $0x154] ss:$8 sps:$4 sm:$0xff]   ;;  %v2636_v63 = vld [vmem:[%s3675_s4 + $0x50] ss:$8 sps:$4 sm:$0xff]  }
  0x3d   :  { %v2639_v0 = vld [vmem:[%s3675_s4 + $0x150] ss:$8 sps:$4 sm:$0xff]  }
  0x3f   :  { %662 = vmatpush1.bf16.msra.mxu0 %v2556_v2  ;;  %744 = vmatpush1.bf16.msra.mxu1 %v2557_v3  ;;  %v2644_v2 = vld [vmem:[%s3675_s4 + $0x64] ss:$8 sps:$4 sm:$0xff]  }
  0x40   :  { %672 = vmatprep.subr.bf16.mxu0 %v2560_v4  ;;  %754 = vmatprep.subr.bf16.mxu1 %v2563_v6  ;;  %v2647_v3 = vld [vmem:[%s3675_s4 + $0x164] ss:$8 sps:$4 sm:$0xff]   ;;  %v2642_v4 = vld [vmem:[%s3675_s4 + $0x60] ss:$8 sps:$4 sm:$0xff]   ;;  %v2650_v6 = vld [vmem:[%s3675_s4 + $0x74] ss:$8 sps:$4 sm:$0xff]  }
  0x42   :  { %664 = vmatmul.mubr.bf16.vlgmr.msra.gmra.mrb[0].mxu0 %v30_v9  ;;  %746 = vmatmul.mubr.bf16.vlgmr.msra.gmra.mrb[0].mxu1 %v30_v9  ;;  %v2651_v9 = vld [vmem:[%s3675_s4 + $0x170] ss:$8 sps:$4 sm:$0xff]  }
  0x43   :  { %673 = vmatpush1.bf16.msra.mxu0 %v2558_v7  ;;  %755 = vmatpush1.bf16.msra.mxu1 %v2561_v8  ;;  %v2653_v7 = vld [vmem:[%s3675_s4 + $0x174] ss:$8 sps:$4 sm:$0xff]   ;;  %v2648_v8 = vld [vmem:[%s3675_s4 + $0x70] ss:$8 sps:$4 sm:$0xff]  }
  0x44   :  { %674 = vmatprep.subr.bf16.mxu0 %v2566_v10  ;;  %756 = vmatprep.subr.bf16.mxu1 %v2569_v11  ;;  %v2656_v10 = vld [vmem:[%s3675_s4 + $0x84] ss:$8 sps:$4 sm:$0xff]  }
  0x45   :  { %704 = vmatprep.mubr.bf16.mxu0 %v2824_v1  ;;  %786 = vmatprep.mubr.bf16.mxu1 %v2824_v1  ;;  %v2593_v1 = vld [vmem:[%s3672_s2 + $0x2ac] ss:$16 sps:$4 sm:$0xff]  }
  0x46   :  { %v2659_v11 = vld [vmem:[%s3675_s4 + $0x184] ss:$8 sps:$4 sm:$0xff]  }
  0x47   :  { %675 = vmatpush1.bf16.msra.mxu0 %v2564_v13  ;;  %757 = vmatpush1.bf16.msra.mxu1 %v2567_v14  ;;  %v2657_v13 = vld [vmem:[%s3675_s4 + $0x180] ss:$8 sps:$4 sm:$0xff]   ;;  %v2662_v14 = vld [vmem:[%s3675_s4 + $0x94] ss:$8 sps:$4 sm:$0xff]  }
  0x48   :  { %676 = vmatprep.subr.bf16.mxu0 %v2572_v15  ;;  %758 = vmatprep.subr.bf16.mxu1 %v2575_v16  ;;  %v2665_v15 = vld [vmem:[%s3675_s4 + $0x194] ss:$8 sps:$4 sm:$0xff]   ;;  %v2660_v16 = vld [vmem:[%s3675_s4 + $0x90] ss:$8 sps:$4 sm:$0xff]  }
  0x4b   :  { %677 = vmatpush1.bf16.msra.mxu0 %v2570_v17  ;;  %759 = vmatpush1.bf16.msra.mxu1 %v2573_v18  ;;  %v2663_v17 = vld [vmem:[%s3675_s4 + $0x190] ss:$8 sps:$4 sm:$0xff]   ;;  %v2668_v18 = vld [vmem:[%s3675_s4 + $0xa4] ss:$8 sps:$4 sm:$0xff]  }
  0x4c   :  { %678 = vmatprep.subr.bf16.mxu0 %v2578_v20  ;;  %760 = vmatprep.subr.bf16.mxu1 %v2581_v21  ;;  %v2666_v20 = vld [vmem:[%s3675_s4 + $0xa0] ss:$8 sps:$4 sm:$0xff]  }
  0x4d   :  { %v2669_v21 = vld [vmem:[%s3675_s4 + $0x1a0] ss:$8 sps:$4 sm:$0xff]  }
  0x4f   :  { %679 = vmatpush1.bf16.msra.mxu0 %v2576_v22  ;;  %761 = vmatpush1.bf16.msra.mxu1 %v2579_v23  ;;  %v2674_v22 = vld [vmem:[%s3675_s4 + $0xb4] ss:$8 sps:$4 sm:$0xff]  }
  0x50   :  { %680 = vmatprep.subr.bf16.mxu0 %v2584_v24  ;;  %762 = vmatprep.subr.bf16.mxu1 %v2587_v25  ;;  %v2677_v23 = vld [vmem:[%s3675_s4 + $0x1b4] ss:$8 sps:$4 sm:$0xff]   ;;  %v2672_v24 = vld [vmem:[%s3675_s4 + $0xb0] ss:$8 sps:$4 sm:$0xff]  }
  0x51   :  { %v2675_v25 = vld [vmem:[%s3675_s4 + $0x1b0] ss:$8 sps:$4 sm:$0xff]  }
  0x53   :  { %681 = vmatpush1.bf16.msra.mxu0 %v2582_v26  ;;  %763 = vmatpush1.bf16.msra.mxu1 %v2585_v27  ;;  %v2680_v26 = vld [vmem:[%s3675_s4 + $0xc4] ss:$8 sps:$4 sm:$0xff]  }
  0x54   :  { %682 = vmatprep.subr.bf16.mxu0 %v2590_v28  ;;  %764 = vmatprep.subr.bf16.mxu1 %v2593_v1  ;;  %v2683_v27 = vld [vmem:[%s3675_s4 + $0x1c4] ss:$8 sps:$4 sm:$0xff]   ;;  %v2678_v28 = vld [vmem:[%s3675_s4 + $0xc0] ss:$8 sps:$4 sm:$0xff]  }
  0x55   :  { %v2681_v1 = vld [vmem:[%s3675_s4 + $0x1c0] ss:$8 sps:$4 sm:$0xff]  }
  0x57   :  { %683 = vmatpush1.bf16.msra.mxu0 %v2588_v29  ;;  %765 = vmatpush1.bf16.msra.mxu1 %v2591_v30  ;;  %v2686_v29 = vld [vmem:[%s3675_s4 + $0xd4] ss:$8 sps:$4 sm:$0xff]  }
  0x58   :  { %684 = vmatprep.subr.bf16.mxu0 %v2596_v31  ;;  %766 = vmatprep.subr.bf16.mxu1 %v2599_v32  ;;  %v2689_v30 = vld [vmem:[%s3675_s4 + $0x1d4] ss:$8 sps:$4 sm:$0xff]   ;;  %v2684_v31 = vld [vmem:[%s3675_s4 + $0xd0] ss:$8 sps:$4 sm:$0xff]  }
  0x59   :  { %v2687_v32 = vld [vmem:[%s3675_s4 + $0x1d0] ss:$8 sps:$4 sm:$0xff]  }
  0x5b   :  { %685 = vmatpush1.bf16.msra.mxu0 %v2594_v33  ;;  %767 = vmatpush1.bf16.msra.mxu1 %v2597_v34  ;;  %v2692_v33 = vld [vmem:[%s3675_s4 + $0xe4] ss:$8 sps:$4 sm:$0xff]  }
  0x5c   :  { %686 = vmatprep.subr.bf16.mxu0 %v2602_v35  ;;  %768 = vmatprep.subr.bf16.mxu1 %v2605_v36  ;;  %v2695_v34 = vld [vmem:[%s3675_s4 + $0x1e4] ss:$8 sps:$4 sm:$0xff]   ;;  %v2690_v35 = vld [vmem:[%s3675_s4 + $0xe0] ss:$8 sps:$4 sm:$0xff]  }
  0x5d   :  { %v2693_v36 = vld [vmem:[%s3675_s4 + $0x1e0] ss:$8 sps:$4 sm:$0xff]  }
  0x5f   :  { %687 = vmatpush1.bf16.msra.mxu0 %v2600_v38  ;;  %769 = vmatpush1.bf16.msra.mxu1 %v2603_v39  ;;  %v2701_v38 = vld [vmem:[%s3675_s4 + $0x1f4] ss:$8 sps:$4 sm:$0xff]   ;;  %v2696_v39 = vld [vmem:[%s3675_s4 + $0xf0] ss:$8 sps:$4 sm:$0xff]  }
  0x60   :  { %1359 = vmatprep.subr.bf16.mxu0 %v2608_v40  ;;  %1400 = vmatprep.subr.bf16.mxu1 %v2611_v41  ;;  %v2699_v40 = vld [vmem:[%s3675_s4 + $0x1f0] ss:$8 sps:$4 sm:$0xff]   ;;  %v2704_v41 = vld [vmem:[%s3676_s3 + $0x4] ss:$8 sps:$4 sm:$0xff]  }
  0x62   :  { %705 = vmatmul.mubr.bf16.vlgmr.msra.gmra.mrb[0].mxu0 %v32_v42  ;;  %787 = vmatmul.mubr.bf16.vlgmr.msra.gmra.mrb[0].mxu1 %v32_v42  ;;  %v2707_v42 = vld [vmem:[%s3676_s3 + $0x104] ss:$8 sps:$4 sm:$0xff]  }
  0x63   :  { %1360 = vmatpush1.bf16.msra.mxu0 %v2606_v43  ;;  %1401 = vmatpush1.bf16.msra.mxu1 %v2609_v44  ;;  %v131_v43 = vlaneseq }
  0x64   :  { %1361 = vmatprep.subr.bf16.mxu0 %v2614_v45  ;;  %1402 = vmatprep.subr.bf16.mxu1 %v2617_v46 }
  0x65   :  { %v132_v44 = vshrl.u32 %v131_v43, 7  ;;  %v2723_v43 = vld [vmem:[%s3676_s3 + $0x130] ss:$8 sps:$4 sm:$0xff]  }
  0x67   :  { %1362 = vmatpush1.bf16.msra.mxu0 %v2612_v47  ;;  %1403 = vmatpush1.bf16.msra.mxu1 %v2615_v48  ;;  %v3369_v45 = vsub.s32 0, %v132_v44  ;;  %v3371_v46 = vsub.s32 1, %v132_v44  ;;  %v3373_v47 = vsub.s32 2, %v132_v44  ;;  %v3375_v48 = vsub.s32 3, %v132_v44  ;;  %v2728_v44 = vld [vmem:[%s3676_s3 + $0x44] ss:$8 sps:$4 sm:$0xff]  }
  0x68   :  { %1363 = vmatprep.subr.bf16.mxu0 %v2620_v49  ;;  %1404 = vmatprep.subr.bf16.mxu1 %v2623_v50  ;;  %v804_v49 = vld [vmem:[%s3677_s6 + $0x11] sm:$0xf] }
  0x6b   :  { %1364 = vmatpush1.bf16.msra.mxu0 %v2618_v51  ;;  %1405 = vmatpush1.bf16.msra.mxu1 %v2621_v52  ;;  %v835_v51 = vld [vmem:[%s3677_s6 + $0x15] sm:$0xf]  ;;  %v814_v52 = vrot.slane %v804_v49, %v3369_v45 }
  0x6c   :  { %1365 = vmatprep.subr.bf16.mxu0 %v2626_v53  ;;  %1406 = vmatprep.subr.bf16.mxu1 %v2629_v54  ;;  %v818_v53 = vrot.slane %v804_v49, %v3371_v46  ;;  %v822_v54 = vrot.slane %v804_v49, %v3373_v47 }
  0x6f   :  { %1366 = vmatpush1.bf16.msra.mxu0 %v2624_v55  ;;  %1407 = vmatpush1.bf16.msra.mxu1 %v2627_v56  ;;  %v826_v55 = vrot.slane %v804_v49, %v3375_v48  ;;  %v844_v56 = vrot.slane %v835_v51, %v3369_v45  ;;  %v2731_v49 = vld [vmem:[%s3676_s3 + $0x144] ss:$8 sps:$4 sm:$0xff]  }
  0x70   :  { %1367 = vmatprep.subr.bf16.mxu0 %v2632_v57  ;;  %1408 = vmatprep.subr.bf16.mxu1 %v2635_v58  ;;  %v848_v57 = vrot.slane %v835_v51, %v3371_v46  ;;  %v852_v58 = vrot.slane %v835_v51, %v3373_v47 }
  0x73   :  { %1368 = vmatpush1.bf16.msra.mxu0 %v2630_v59  ;;  %1409 = vmatpush1.bf16.msra.mxu1 %v2633_v60  ;;  %v856_v59 = vrot.slane %v835_v51, %v3375_v48  ;;  %v869_v60 = vld [vmem:[%s3677_s6 + $0x4] sm:$0xf]  ;;  %v2729_v51 = vld [vmem:[%s3676_s3 + $0x140] ss:$8 sps:$4 sm:$0xff]  }
  0x74   :  { %1369 = vmatprep.subr.bf16.mxu0 %v2638_v61  ;;  %1410 = vmatprep.subr.bf16.mxu1 %v2641_v62 }
  0x77   :  { %1370 = vmatpush1.bf16.msra.mxu0 %v2636_v63  ;;  %1411 = vmatpush1.bf16.msra.mxu1 %v2639_v0 }
  0x78   :  { %1371 = vmatprep.subr.bf16.mxu0 %v2644_v2  ;;  %1412 = vmatprep.subr.bf16.mxu1 %v2647_v3  ;;  %v874_v2 = vrot.slane %v869_v60, %v3369_v45  ;;  %v882_v3 = vrot.slane %v869_v60, %v3373_v47 }
  0x7b   :  { %1372 = vmatpush1.bf16.msra.mxu0 %v2642_v4  ;;  %1413 = vmatpush1.bf16.msra.mxu1 %v2645_v5  ;;  %v878_v5 = vrot.slane %v869_v60, %v3371_v46 }
  0x7c   :  { %1373 = vmatprep.subr.bf16.mxu0 %v2650_v6  ;;  %1414 = vmatprep.subr.bf16.mxu1 %v2653_v7  ;;  %v886_v6 = vrot.slane %v869_v60, %v3375_v48  ;;  %v2746_v60 = vld [vmem:[%s3676_s3 + $0x74] ss:$8 sps:$4 sm:$0xff]  }
  0x7f   :  { %1374 = vmatpush1.bf16.msra.mxu0 %v2648_v8  ;;  %1415 = vmatpush1.bf16.msra.mxu1 %v2651_v9 }
  0x80   :  { %1375 = vmatprep.subr.bf16.mxu0 %v2656_v10  ;;  %1416 = vmatprep.subr.bf16.mxu1 %v2659_v11 }
  0x83   :  { %1376 = vmatpush1.bf16.msra.mxu0 %v2654_v12  ;;  %1417 = vmatpush1.bf16.msra.mxu1 %v2657_v13 }
  0x84   :  { %1377 = vmatprep.subr.bf16.mxu0 %v2662_v14  ;;  %1418 = vmatprep.subr.bf16.mxu1 %v2665_v15 }
  0x87   :  { %1378 = vmatpush1.bf16.msra.mxu0 %v2660_v16  ;;  %1419 = vmatpush1.bf16.msra.mxu1 %v2663_v17 }
  0x88   :  { %1379 = vmatprep.subr.bf16.mxu0 %v2668_v18  ;;  %1420 = vmatprep.subr.bf16.mxu1 %v2671_v19 }
  0x8b   :  { %1380 = vmatpush1.bf16.msra.mxu0 %v2666_v20  ;;  %1421 = vmatpush1.bf16.msra.mxu1 %v2669_v21 }
  0x8c   :  { %1381 = vmatprep.subr.bf16.mxu0 %v2674_v22  ;;  %1422 = vmatprep.subr.bf16.mxu1 %v2677_v23 }
  0x8f   :  { %1382 = vmatpush1.bf16.msra.mxu0 %v2672_v24  ;;  %1423 = vmatpush1.bf16.msra.mxu1 %v2675_v25 }
  0x90   :  { %1383 = vmatprep.subr.bf16.mxu0 %v2680_v26  ;;  %1424 = vmatprep.subr.bf16.mxu1 %v2683_v27 }
  0x93   :  { %1384 = vmatpush1.bf16.msra.mxu0 %v2678_v28  ;;  %1425 = vmatpush1.bf16.msra.mxu1 %v2681_v1 }
  0x94   :  { %1385 = vmatprep.subr.bf16.mxu0 %v2686_v29  ;;  %1426 = vmatprep.subr.bf16.mxu1 %v2689_v30  ;;  %v2702_v29 = vld [vmem:[%s3676_s3] ss:$8 sps:$4 sm:$0xff]  }
  0x97   :  { %1386 = vmatpush1.bf16.msra.mxu0 %v2684_v31  ;;  %1427 = vmatpush1.bf16.msra.mxu1 %v2687_v32  ;;  %v2705_v31 = vld [vmem:[%s3676_s3 + $0x100] ss:$8 sps:$4 sm:$0xff]   ;;  %v2710_v32 = vld [vmem:[%s3676_s3 + $0x14] ss:$8 sps:$4 sm:$0xff]  }
  0x98   :  { %1387 = vmatprep.subr.bf16.mxu0 %v2692_v33  ;;  %1428 = vmatprep.subr.bf16.mxu1 %v2695_v34  ;;  %v2713_v33 = vld [vmem:[%s3676_s3 + $0x114] ss:$8 sps:$4 sm:$0xff]   ;;  %v2708_v34 = vld [vmem:[%s3676_s3 + $0x10] ss:$8 sps:$4 sm:$0xff]  }
  0x99   :  { %v808_v50 = vpop.permute.xlu0 %807 }
  0x9a   :  { %v831_v61 = vmul.f32 %v814_v52, %v808_v50  ;;  %v832_v62 = vmul.f32 %v818_v53, %v808_v50  ;;  %v833_v63 = vmul.f32 %v822_v54, %v808_v50  ;;  %v834_v0 = vmul.f32 %v826_v55, %v808_v50  ;;  %v2726_v50 = vld [vmem:[%s3676_s3 + $0x40] ss:$8 sps:$4 sm:$0xff]   ;;  %v2734_v52 = vld [vmem:[%s3676_s3 + $0x54] ss:$8 sps:$4 sm:$0xff]   ;;  %v2732_v54 = vld [vmem:[%s3676_s3 + $0x50] ss:$8 sps:$4 sm:$0xff]  }
  0x9b   :  { %1388 = vmatpush1.bf16.msra.mxu0 %v2690_v35  ;;  %1429 = vmatpush1.bf16.msra.mxu1 %v2693_v36  ;;  %v2711_v35 = vld [vmem:[%s3676_s3 + $0x110] ss:$8 sps:$4 sm:$0xff]   ;;  %v2716_v36 = vld [vmem:[%s3676_s3 + $0x24] ss:$8 sps:$4 sm:$0xff]   ;;  %v2737_v53 = vld [vmem:[%s3676_s3 + $0x154] ss:$8 sps:$4 sm:$0xff]  }
  0x9c   :  { %1389 = vmatprep.subr.bf16.mxu0 %v2698_v37  ;;  %1430 = vmatprep.subr.bf16.mxu1 %v2701_v38  ;;  %v2719_v37 = vld [vmem:[%s3676_s3 + $0x124] ss:$8 sps:$4 sm:$0xff]   ;;  %v2714_v38 = vld [vmem:[%s3676_s3 + $0x20] ss:$8 sps:$4 sm:$0xff]   ;;  %v2735_v55 = vld [vmem:[%s3676_s3 + $0x150] ss:$8 sps:$4 sm:$0xff]  }
  0x9f   :  { %1390 = vmatpush1.bf16.msra.mxu0 %v2696_v39  ;;  %1431 = vmatpush1.bf16.msra.mxu1 %v2699_v40  ;;  %v2717_v39 = vld [vmem:[%s3676_s3 + $0x120] ss:$8 sps:$4 sm:$0xff]   ;;  %v2722_v40 = vld [vmem:[%s3676_s3 + $0x34] ss:$8 sps:$4 sm:$0xff]  }
  0xa0   :  { %1761 = vmatprep.subr.bf16.mxu0 %v2704_v41  ;;  %1802 = vmatprep.subr.bf16.mxu1 %v2707_v42  ;;  %v838_v4 = vpop.permute.xlu0 %837  ;;  %v2725_v41 = vld [vmem:[%s3676_s3 + $0x134] ss:$8 sps:$4 sm:$0xff]   ;;  %v2720_v42 = vld [vmem:[%s3676_s3 + $0x30] ss:$8 sps:$4 sm:$0xff]  }
  0xa1   :  { %v861_v7 = vmul.f32 %v844_v56, %v838_v4  ;;  %v862_v8 = vmul.f32 %v848_v57, %v838_v4  ;;  %v863_v9 = vmul.f32 %v852_v58, %v838_v4  ;;  %v864_v10 = vmul.f32 %v856_v59, %v838_v4  ;;  %v2740_v56 = vld [vmem:[%s3676_s3 + $0x64] ss:$8 sps:$4 sm:$0xff]   ;;  %v2738_v58 = vld [vmem:[%s3676_s3 + $0x60] ss:$8 sps:$4 sm:$0xff]  }
  0xa2   :  { %v2743_v57 = vld [vmem:[%s3676_s3 + $0x164] ss:$8 sps:$4 sm:$0xff]   ;;  %v2741_v59 = vld [vmem:[%s3676_s3 + $0x160] ss:$8 sps:$4 sm:$0xff]  }
  0xa3   :  { %v865_v11 = vadd.f32 %v861_v7, %v831_v61  ;;  %v866_v12 = vadd.f32 %v862_v8, %v832_v62  ;;  %v867_v13 = vadd.f32 %v863_v9, %v833_v63  ;;  %v868_v14 = vadd.f32 %v864_v10, %v834_v0  ;;  %v2749_v61 = vld [vmem:[%s3676_s3 + $0x174] ss:$8 sps:$4 sm:$0xff]   ;;  %v2744_v62 = vld [vmem:[%s3676_s3 + $0x70] ss:$8 sps:$4 sm:$0xff]   ;;  %v2752_v0 = vld [vmem:[%s3676_s3 + $0x84] ss:$8 sps:$4 sm:$0xff]  }
  0xa4   :  { %v2747_v63 = vld [vmem:[%s3676_s3 + $0x170] ss:$8 sps:$4 sm:$0xff]   ;;  %v2753_v4 = vld [vmem:[%s3676_s3 + $0x180] ss:$8 sps:$4 sm:$0xff]   ;;  %v2764_v9 = vld [vmem:[%s3676_s3 + $0xa4] ss:$8 sps:$4 sm:$0xff]  }
  0xa5   :  { %v891_v15 = vadd.f32 %v874_v2, %v865_v11  ;;  %v893_v16 = vadd.f32 %v882_v3, %v867_v13  ;;  %v892_v17 = vadd.f32 %v878_v5, %v866_v12  ;;  %v894_v18 = vadd.f32 %v886_v6, %v868_v14  ;;  %v2755_v2 = vld [vmem:[%s3676_s3 + $0x184] ss:$8 sps:$4 sm:$0xff]   ;;  %v2750_v3 = vld [vmem:[%s3676_s3 + $0x80] ss:$8 sps:$4 sm:$0xff]   ;;  %v2758_v5 = vld [vmem:[%s3676_s3 + $0x94] ss:$8 sps:$4 sm:$0xff]  }
  0xa6   :  { %v2761_v6 = vld [vmem:[%s3676_s3 + $0x194] ss:$8 sps:$4 sm:$0xff]   ;;  %v2756_v7 = vld [vmem:[%s3676_s3 + $0x90] ss:$8 sps:$4 sm:$0xff]   ;;  %v2767_v10 = vld [vmem:[%s3676_s3 + $0x1a4] ss:$8 sps:$4 sm:$0xff]  }
  0xa7   :  { %v895_v19 = vmul.f32 0.2, %v891_v15  ;;  %v897_v20 = vmul.f32 0.2, %v893_v16  ;;  %v896_v21 = vmul.f32 0.2, %v892_v17 }
  0xa8   :  { %v898_v22 = vmul.f32 0.2, %v894_v18  ;;  %v2759_v8 = vld [vmem:[%s3676_s3 + $0x190] ss:$8 sps:$4 sm:$0xff]   ;;  %v2762_v11 = vld [vmem:[%s3676_s3 + $0xa0] ss:$8 sps:$4 sm:$0xff]  }
  0xa9   :  { %v900_v23 = vmax.f32 %v892_v17, %v896_v21  ;;  %v899_v24 = vmax.f32 %v891_v15, %v895_v19  ;;  %v901_v25 = vmax.f32 %v893_v16, %v897_v20  ;;  %v2765_v12 = vld [vmem:[%s3676_s3 + $0x1a0] ss:$8 sps:$4 sm:$0xff]   ;;  %v2770_v13 = vld [vmem:[%s3676_s3 + $0xb4] ss:$8 sps:$4 sm:$0xff]   ;;  %v2768_v15 = vld [vmem:[%s3676_s3 + $0xb0] ss:$8 sps:$4 sm:$0xff]  }
  0xaa   :  { %v902_v26 = vmax.f32 %v894_v18, %v898_v22  ;;  %v2773_v14 = vld [vmem:[%s3676_s3 + $0x1b4] ss:$8 sps:$4 sm:$0xff]   ;;  %v2771_v16 = vld [vmem:[%s3676_s3 + $0x1b0] ss:$8 sps:$4 sm:$0xff]   ;;  %v2776_v17 = vld [vmem:[%s3676_s3 + $0xc4] ss:$8 sps:$4 sm:$0xff]  }
  0xab   :  { %v972_v27 = vpack.c.bf16 %v900_v23, %v900_v23  ;;  %v971_v28 = vpack.c.bf16 %v899_v24, %v899_v24  ;;  %v973_v1 = vpack.c.bf16 %v901_v25, %v901_v25  ;;  %v2779_v18 = vld [vmem:[%s3676_s3 + $0x1c4] ss:$8 sps:$4 sm:$0xff]   ;;  %v2774_v19 = vld [vmem:[%s3676_s3 + $0xc0] ss:$8 sps:$4 sm:$0xff]   ;;  %v2782_v21 = vld [vmem:[%s3676_s3 + $0xd4] ss:$8 sps:$4 sm:$0xff]  }
  0xac   :  { %v974_v30 = vpack.c.bf16 %v902_v26, %v902_v26  ;;  %v2777_v20 = vld [vmem:[%s3676_s3 + $0x1c0] ss:$8 sps:$4 sm:$0xff]   ;;  %v2785_v22 = vld [vmem:[%s3676_s3 + $0x1d4] ss:$8 sps:$4 sm:$0xff]   ;;  %v2780_v23 = vld [vmem:[%s3676_s3 + $0xd0] ss:$8 sps:$4 sm:$0xff]  }
  0xad   :  { %1391 = vmatprep.mubr.bf16.mxu0 %v972_v27  ;;  %v2783_v24 = vld [vmem:[%s3676_s3 + $0x1d0] ss:$8 sps:$4 sm:$0xff]   ;;  %v2788_v25 = vld [vmem:[%s3676_s3 + $0xe4] ss:$8 sps:$4 sm:$0xff]   ;;  %v2786_v27 = vld [vmem:[%s3676_s3 + $0xe0] ss:$8 sps:$4 sm:$0xff]  }
  0xae   :  { %1432 = vmatprep.mubr.bf16.mxu1 %v974_v30  ;;  %1392 = vmatmul.mubr.bf16.vlgmr.msra.gmra.mrb[4].mxu0 %v971_v28  ;;  %v2791_v26 = vld [vmem:[%s3676_s3 + $0x1e4] ss:$8 sps:$4 sm:$0xff]   ;;  %v2789_v28 = vld [vmem:[%s3676_s3 + $0x1e0] ss:$8 sps:$4 sm:$0xff]   ;;  %v2792_v30 = vld [vmem:[%s3676_s3 + $0xf0] ss:$8 sps:$4 sm:$0xff]  }
  0xaf   :  { %1433 = vmatmul.mubr.bf16.vlgmr.msra.gmra.mrb[4].mxu1 %v973_v1  ;;  %1762 = vmatpush1.bf16.msra.mxu0 %v2702_v29  ;;  %v2794_v1 = vld [vmem:[%s3676_s3 + $0xf4] ss:$8 sps:$4 sm:$0xff]  }
  0xb0   :  { %1803 = vmatpush1.bf16.msra.mxu1 %v2705_v31  ;;  %1763 = vmatprep.subr.bf16.mxu0 %v2710_v32  ;;  %v2797_v29 = vld [vmem:[%s3676_s3 + $0x1f4] ss:$8 sps:$4 sm:$0xff]   ;;  %v2795_v31 = vld [vmem:[%s3676_s3 + $0x1f0] ss:$8 sps:$4 sm:$0xff]   ;;  %v129_v32 = vld [vmem:[%s3677_s6] sm:$0xf] }
  0xb1   :  { %1804 = vmatprep.subr.bf16.mxu1 %v2713_v33  ;;  %v134_v33 = vrot.slane %v129_v32, %v3369_v45 }
  0xb3   :  { %1764 = vmatpush1.bf16.msra.mxu0 %v2708_v34  ;;  %v142_v34 = vrot.slane %v129_v32, %v3373_v47 }
  0xb4   :  { %1805 = vmatpush1.bf16.msra.mxu1 %v2711_v35  ;;  %1765 = vmatprep.subr.bf16.mxu0 %v2716_v36  ;;  %v138_v35 = vrot.slane %v129_v32, %v3371_v46  ;;  %v146_v36 = vrot.slane %v129_v32, %v3375_v48 }
  0xb5   :  { %1806 = vmatprep.subr.bf16.mxu1 %v2719_v37 }
  0xb7   :  { %1766 = vmatpush1.bf16.msra.mxu0 %v2714_v38 }
  0xb8   :  { %1807 = vmatpush1.bf16.msra.mxu1 %v2717_v39  ;;  %1767 = vmatprep.subr.bf16.mxu0 %v2722_v40 }
  0xb9   :  { %1808 = vmatprep.subr.bf16.mxu1 %v2725_v41 }
  0xbb   :  { %1768 = vmatpush1.bf16.msra.mxu0 %v2720_v42 }
  0xbc   :  { %1809 = vmatpush1.bf16.msra.mxu1 %v2723_v43  ;;  %1769 = vmatprep.subr.bf16.mxu0 %v2728_v44 }
  0xbd   :  { %1810 = vmatprep.subr.bf16.mxu1 %v2731_v49 }
  0xbf   :  { %1770 = vmatpush1.bf16.msra.mxu0 %v2726_v50 }
  0xc0   :  { %1811 = vmatpush1.bf16.msra.mxu1 %v2729_v51  ;;  %1771 = vmatprep.subr.bf16.mxu0 %v2734_v52 }
  0xc1   :  { %1812 = vmatprep.subr.bf16.mxu1 %v2737_v53 }
  0xc3   :  { %1772 = vmatpush1.bf16.msra.mxu0 %v2732_v54 }
  0xc4   :  { %1813 = vmatpush1.bf16.msra.mxu1 %v2735_v55  ;;  %1773 = vmatprep.subr.bf16.mxu0 %v2740_v56 }
  0xc5   :  { %1814 = vmatprep.subr.bf16.mxu1 %v2743_v57 }
  0xc7   :  { %1774 = vmatpush1.bf16.msra.mxu0 %v2738_v58 }
  0xc8   :  { %1815 = vmatpush1.bf16.msra.mxu1 %v2741_v59  ;;  %1775 = vmatprep.subr.bf16.mxu0 %v2746_v60 }
  0xc9   :  { %1816 = vmatprep.subr.bf16.mxu1 %v2749_v61 }
  0xcb   :  { %1776 = vmatpush1.bf16.msra.mxu0 %v2744_v62 }
  0xcc   :  { %1817 = vmatpush1.bf16.msra.mxu1 %v2747_v63  ;;  %1777 = vmatprep.subr.bf16.mxu0 %v2752_v0 }
  0xcd   :  { %1818 = vmatprep.subr.bf16.mxu1 %v2755_v2 }
  0xcf   :  { %1778 = vmatpush1.bf16.msra.mxu0 %v2750_v3 }
  0xd0   :  { %1819 = vmatpush1.bf16.msra.mxu1 %v2753_v4  ;;  %1779 = vmatprep.subr.bf16.mxu0 %v2758_v5 }
  0xd1   :  { %1820 = vmatprep.subr.bf16.mxu1 %v2761_v6 }
  0xd3   :  { %1780 = vmatpush1.bf16.msra.mxu0 %v2756_v7 }
  0xd4   :  { %1821 = vmatpush1.bf16.msra.mxu1 %v2759_v8  ;;  %1781 = vmatprep.subr.bf16.mxu0 %v2764_v9 }
  0xd5   :  { %1822 = vmatprep.subr.bf16.mxu1 %v2767_v10  ;;  %v2798_v10 = vld [vmem:[%s3678_s5 + $0x40] sm:$0xff]  }
  0xd7   :  { %1782 = vmatpush1.bf16.msra.mxu0 %v2762_v11  ;;  %v2799_v11 = vld [vmem:[%s3678_s5] sm:$0xff]  }
  0xd8   :  { %1823 = vmatpush1.bf16.msra.mxu1 %v2765_v12  ;;  %1783 = vmatprep.subr.bf16.mxu0 %v2770_v13  ;;  %v2800_v12 = vld [vmem:[%s3678_s5 + $0x48] sm:$0xff]  }
  0xd9   :  { %1824 = vmatprep.subr.bf16.mxu1 %v2773_v14  ;;  %v2801_v13 = vld [vmem:[%s3678_s5 + $0x8] sm:$0xff]   ;;  %v2802_v14 = vld [vmem:[%s3678_s5 + $0x50] sm:$0xff]  }
  0xdb   :  { %1784 = vmatpush1.bf16.msra.mxu0 %v2768_v15  ;;  %v2803_v15 = vld [vmem:[%s3678_s5 + $0x10] sm:$0xff]  }
  0xdc   :  { %1825 = vmatpush1.bf16.msra.mxu1 %v2771_v16  ;;  %1785 = vmatprep.subr.bf16.mxu0 %v2776_v17  ;;  %v2804_v16 = vld [vmem:[%s3678_s5 + $0x58] sm:$0xff]  }
  0xdd   :  { %1826 = vmatprep.subr.bf16.mxu1 %v2779_v18  ;;  %v2805_v17 = vld [vmem:[%s3678_s5 + $0x18] sm:$0xff]   ;;  %v2806_v18 = vld [vmem:[%s3678_s5 + $0x60] sm:$0xff]  }
  0xdf   :  { %1786 = vmatpush1.bf16.msra.mxu0 %v2774_v19  ;;  %v2807_v19 = vld [vmem:[%s3678_s5 + $0x20] sm:$0xff]  }
  0xe0   :  { %1827 = vmatpush1.bf16.msra.mxu1 %v2777_v20  ;;  %1787 = vmatprep.subr.bf16.mxu0 %v2782_v21  ;;  %v2808_v20 = vld [vmem:[%s3678_s5 + $0x68] sm:$0xff]  }
  0xe1   :  { %1828 = vmatprep.subr.bf16.mxu1 %v2785_v22  ;;  %v2809_v21 = vld [vmem:[%s3678_s5 + $0x28] sm:$0xff]   ;;  %v2810_v22 = vld [vmem:[%s3678_s5 + $0x70] sm:$0xff]  }
  0xe3   :  { %1788 = vmatpush1.bf16.msra.mxu0 %v2780_v23  ;;  %v2811_v23 = vld [vmem:[%s3678_s5 + $0x30] sm:$0xff]  }
  0xe4   :  { %1829 = vmatpush1.bf16.msra.mxu1 %v2783_v24  ;;  %1789 = vmatprep.subr.bf16.mxu0 %v2788_v25  ;;  %v2812_v24 = vld [vmem:[%s3678_s5 + $0x78] sm:$0xff]  }
  0xe5   :  { %1830 = vmatprep.subr.bf16.mxu1 %v2791_v26  ;;  %v2813_v25 = vld [vmem:[%s3678_s5 + $0x38] sm:$0xff]   ;;  %v1843_v26 = vld [vmem:[%s3677_s6 + $0x8] sm:$0x3] }
  0xe7   :  { %1790 = vmatpush1.bf16.msra.mxu0 %v2786_v27 }
  0xe8   :  { %1831 = vmatpush1.bf16.msra.mxu1 %v2789_v28  ;;  %1791 = vmatprep.subr.bf16.mxu0 %v2794_v1 }
  0xe9   :  { %1832 = vmatprep.subr.bf16.mxu1 %v2797_v29  ;;  %v1848_v29 = vrot.slane %v1843_v26, %v3369_v45 }
  0xeb   :  { %1792 = vmatpush1.bf16.msra.mxu0 %v2792_v30 }
  0xec   :  { %1833 = vmatpush1.bf16.msra.mxu1 %v2795_v31  ;;  %2422 = vmatprep.subr.bf16.mxu0 %v2798_v10 }
 0x135   :  { %v706_v37 = vpop.f32.mrb[0].mxu0  ;;  %v788_v38 = vpop.f32.mrb[0].mxu1 }
 0x136   :  { %v2444_v39 = vadd.f32 %v706_v37, %v134_v33  ;;  %v2446_v40 = vadd.f32 %v788_v38, %v142_v34  ;;  %v708_v41 = vpop.f32.mrb[1].mxu0  ;;  %v790_v42 = vpop.f32.mrb[1].mxu1  ;;  %v1852_v33 = vrot.slane %v1843_v26, %v3371_v46 }
 0x137   :  { %v2445_v43 = vadd.f32 %v708_v41, %v138_v35  ;;  %v2447_v44 = vadd.f32 %v790_v42, %v146_v36  ;;  %v710_v49 = vpop.f32.mrb[2].mxu0  ;;  %v792_v50 = vpop.f32.mrb[2].mxu1 }
 0x138   :  { %v795_v51 = vmul.f32 0.2, %v2444_v39  ;;  %v797_v52 = vmul.f32 0.2, %v2446_v40  ;;  %v711_v53 = vpop.f32.mrb[3].mxu0  ;;  %v793_v54 = vpop.f32.mrb[3].mxu1 }
 0x139   :  { %v796_v55 = vmul.f32 0.2, %v2445_v43  ;;  %v798_v47 = vmul.f32 0.2, %v2447_v44 }
 0x13a   :  { %v799_v56 = vmax.f32 %v2444_v39, %v795_v51  ;;  %v801_v57 = vmax.f32 %v2446_v40, %v797_v52 }
 0x13b   :  { %v800_v58 = vmax.f32 %v2445_v43, %v796_v55  ;;  %v802_v48 = vmax.f32 %v2447_v44, %v798_v47 }
 0x13c   :  { %v903_v61 = vpack.c.bf16 %v799_v56, %v799_v56  ;;  %v905_v62 = vpack.c.bf16 %v801_v57, %v801_v57 }
 0x13d   :  { %v904_v59 = vpack.c.bf16 %v800_v58, %v800_v58  ;;  %v906_v60 = vpack.c.bf16 %v802_v48, %v802_v48 }
 0x13f   :  { %1793 = vmatprep.mubr.bf16.mxu0 %v904_v59  ;;  %1834 = vmatprep.mubr.bf16.mxu1 %v906_v60 }
 0x140   :  { %1794 = vmatmul.mubr.bf16.vlgmr.msra.gmra.mrb[8].mxu0 %v903_v61  ;;  %1835 = vmatmul.mubr.bf16.vlgmr.msra.gmra.mrb[8].mxu1 %v905_v62 }
 0x141   :  { %2423 = vmatpush3.bf16.msra.mxu0 %v2799_v11 }
 0x142   :  { %2424 = vmatprep.subr.bf16.mxu0 %v2800_v12 }
 0x145   :  { %2425 = vmatpush3.bf16.msra.mxu0 %v2801_v13 }
 0x146   :  { %2426 = vmatprep.subr.bf16.mxu0 %v2802_v14 }
 0x149   :  { %2427 = vmatpush3.bf16.msra.mxu0 %v2803_v15  ;;  %v1857_v15 = vld [vmem:[%s3677_s6 + $0xa] sm:$0x3] }
 0x14a   :  { %2428 = vmatprep.subr.bf16.mxu0 %v2804_v16  ;;  %v1858_v16 = vld [vmem:[%s3677_s6 + $0xc] sm:$0x3] }
 0x14d   :  { %2429 = vmatpush3.bf16.msra.mxu0 %v2805_v17  ;;  %v1902_v17 = vrot.slane %v1857_v15, %v3369_v45 }
 0x14e   :  { %2430 = vmatprep.subr.bf16.mxu0 %v2806_v18 }
 0x151   :  { %2431 = vmatpush3.bf16.msra.mxu0 %v2807_v19  ;;  %v1906_v19 = vrot.slane %v1857_v15, %v3371_v46 }
 0x152   :  { %2432 = vmatprep.subr.bf16.mxu0 %v2808_v20 }
 0x155   :  { %2433 = vmatpush3.bf16.msra.mxu0 %v2809_v21 }
 0x156   :  { %2434 = vmatprep.subr.bf16.mxu0 %v2810_v22  ;;  %v1915_v22 = vrot.slane %v1858_v16, %v3369_v45  ;;  %v2400_v45 = vld [vmem:[%s3677_s6 + $0xe] ss:$0 sm:$0xff] }
 0x159   :  { %2435 = vmatpush3.bf16.msra.mxu0 %v2811_v23 }
 0x15a   :  { %2436 = vmatprep.subr.bf16.mxu0 %v2812_v24  ;;  %v1919_v24 = vrot.slane %v1858_v16, %v3371_v46 }
 0x15d   :  { %2437 = vmatpush3.bf16.msra.mxu0 %v2813_v25 }
 0x181   :  { %v1393_v63 = vpop.f32.mrb[4].mxu0 }
 0x182   :  { %v1434_v0 = vpop.f32.mrb[4].mxu1  ;;  %v1395_v2 = vpop.f32.mrb[5].mxu0 }
 0x183   :  { %v1435_v3 = vadd.f32 %v1434_v0, %v1393_v63  ;;  %v1436_v4 = vpop.f32.mrb[5].mxu1  ;;  %v1397_v5 = vpop.f32.mrb[6].mxu0 }
 0x184   :  { %v1437_v6 = vadd.f32 %v1436_v4, %v1395_v2  ;;  %v1438_v7 = vpop.f32.mrb[6].mxu1  ;;  %v1398_v8 = vpop.f32.mrb[7].mxu0 }
 0x185   :  { %v1439_v9 = vpop.f32.mrb[7].mxu1 }
 0x213   :  { %v1795_v27 = vpop.f32.mrb[8].mxu0  ;;  %v1836_v28 = vpop.f32.mrb[8].mxu1 }
 0x214   :  { %v1796_v1 = vadd.f32 %v1795_v27, %v1435_v3  ;;  %v1797_v30 = vpop.f32.mrb[9].mxu0  ;;  %v1838_v31 = vpop.f32.mrb[9].mxu1 }
 0x215   :  { %v1798_v32 = vadd.f32 %v1797_v30, %v1437_v6  ;;  %v1799_v34 = vpop.f32.mrb[10].mxu0  ;;  %v1840_v35 = vpop.f32.mrb[10].mxu1 }
 0x216   :  { %v1837_v36 = vadd.f32 %v1836_v28, %v1796_v1  ;;  %v1800_v37 = vpop.f32.mrb[11].mxu0  ;;  %v1841_v38 = vpop.f32.mrb[11].mxu1 }
 0x217   :  { %v1839_v39 = vadd.f32 %v1838_v31, %v1798_v32 }
 0x218   :  { %v1855_v40 = vadd.f32 %v1848_v29, %v1837_v36 }
 0x219   :  { %v1856_v41 = vadd.f32 %v1852_v33, %v1839_v39 }
 0x21a   :  { %v1859_v42 = vrot.slane %v1855_v40, 4 }
 0x21b   :  { %v1865_v43 = vrot.slane %v1856_v41, 4 }
 0x21c   :  { %v1860_v44 = vadd.f32 %v1859_v42, %v1855_v40 }
 0x21d   :  { %v1866_v49 = vadd.f32 %v1865_v43, %v1856_v41 }
 0x21e   :  { %v1861_v50 = vrot.slane %v1860_v44, 2 }
 0x21f   :  { %v1867_v51 = vrot.slane %v1866_v49, 2 }
 0x220   :  { %v1862_v52 = vadd.f32 %v1861_v50, %v1860_v44 }
 0x221   :  { %v1868_v53 = vadd.f32 %v1867_v51, %v1866_v49 }
 0x222   :  { %v1863_v54 = vrot.slane %v1862_v52, 1 }
 0x223   :  { %v1869_v55 = vrot.slane %v1868_v53, 1 }
 0x224   :  { %v1864_v47 = vadd.f32 %v1863_v54, %v1862_v52 }
 0x225   :  { %v1870_v56 = vadd.f32 %v1869_v55, %v1868_v53 }
 0x226   :  { %v1872_v57 = vmul.f32 0.125, %v1864_v47 }
 0x227   :  { %v1873_v58 = vmul.f32 0.125, %v1870_v56 }
 0x228   :  { %v1874_v48 = vsub.f32 %v1855_v40, %v1872_v57 }
 0x229   :  { %v1875_v59 = vsub.f32 %v1856_v41, %v1873_v58 }
 0x22a   :  { %v1876_v60 = vmul.f32 %v1874_v48, %v1874_v48 }
 0x22b   :  { %v1877_v61 = vmul.f32 %v1875_v59, %v1875_v59 }
 0x22c   :  { %v1878_v62 = vrot.slane %v1876_v60, 4 }
 0x22d   :  { %v1884_v63 = vrot.slane %v1877_v61, 4 }
 0x22e   :  { %v1879_v0 = vadd.f32 %v1878_v62, %v1876_v60 }
 0x22f   :  { %v1885_v2 = vadd.f32 %v1884_v63, %v1877_v61  ;;  %v2418_v61 = vld [vmem:[%s3677_s6 + $0x10] ss:$0 sm:$0xff] }
 0x230   :  { %v1880_v3 = vrot.slane %v1879_v0, 2 }
 0x231   :  { %v1886_v4 = vrot.slane %v1885_v2, 2 }
 0x232   :  { %v1881_v5 = vadd.f32 %v1880_v3, %v1879_v0 }
 0x233   :  { %v1887_v6 = vadd.f32 %v1886_v4, %v1885_v2  ;;  %v2419_v2 = vld [vmem:[%s3677_s6 + $0x19] ss:$0 sm:$0xff] }
 0x234   :  { %v1882_v7 = vrot.slane %v1881_v5, 1 }
 0x235   :  { %v1888_v8 = vrot.slane %v1887_v6, 1 }
 0x236   :  { %v1883_v9 = vadd.f32 %v1882_v7, %v1881_v5  ;;  %v2420_v5 = vld [vmem:[%s3677_s6 + $0x1a] ss:$0 sm:$0xff] }
 0x237   :  { %v1889_v10 = vadd.f32 %v1888_v8, %v1887_v6 }
 0x238   :  { %v1890_v11 = vmul.f32 0.125, %v1883_v9 }
 0x239   :  { %v1891_v12 = vmul.f32 0.125, %v1889_v10 }
 0x23a   :  { %v1892_v13 = vadd.f32 1e-05, %v1890_v11 }
 0x23b   :  { %v1893_v14 = vadd.f32 1e-05, %v1891_v12 }
 0x23c   :  { %2814 = vrsqrt.f32 %v1892_v13 }
 0x23d   :  { %2816 = vrsqrt.f32 %v1893_v14 }
 0x246   :  { %v2815_v18 = vpop.eup %2814 }
 0x247   :  { %v2817_v20 = vpop.eup %2816  ;;  %v1896_v21 = vmul.f32 %v2815_v18, %v1874_v48 }
 0x248   :  { %v1897_v23 = vmul.f32 %v2817_v20, %v1875_v59  ;;  %v2417_v59 = vld [vmem:[%s3677_s6 + $0xf] ss:$0 sm:$0xff] }
 0x249   :  { %v1909_v25 = vmul.f32 %v1902_v17, %v1896_v21 }
 0x24a   :  { %v1910_v26 = vmul.f32 %v1906_v19, %v1897_v23 }
 0x24b   :  { %v1922_v27 = vadd.f32 %v1915_v22, %v1909_v25 }
 0x24c   :  { %v1923_v28 = vadd.f32 %v1919_v24, %v1910_v26 }
 0x24d   :  { %v1924_v1 = vmul.f32 0.2, %v1922_v27 }
 0x24e   :  { %v1925_v29 = vmul.f32 0.2, %v1923_v28 }
 0x24f   :  { %v1926_v30 = vmax.f32 %v1922_v27, %v1924_v1 }
 0x250   :  { %v1927_v31 = vmax.f32 %v1923_v28, %v1925_v29 }
 0x251   :  { %v1928_v33 = vpack.c.bf16 %v1926_v30, %v1926_v30 }
 0x252   :  { %v1929_v32 = vpack.c.bf16 %v1927_v31, %v1927_v31 }
 0x254   :  { %2097 = vmatprep.mubr.bf16.mxu0 %v1929_v32 }
 0x255   :  { %2098 = vmatmul.mubr.bf16.vlgmr.msra.gmra.mrb[12].mxu0 %v1928_v33 }
 0x328   :  { %v2438_v34 = vpop.f32.mrb[12].mxu0 }
 0x329   :  { %v2439_v35 = vpop.f32.mrb[13].mxu0 }
 0x32a   :  { %v2440_v36 = vadd.f32 %v2439_v35, %v2438_v34  ;;  %v2441_v46 = vpop.f32.mrb[14].mxu0 }
 0x32b   :  { %v2442_v37 = vpop.f32.mrb[15].mxu0 }
 0x32c   :  { %v2100_v38 = vadd.f32 %v2440_v36, %v2400_v45 }
 0x32e   :  { %v2107_v39 = vrot.slane %v2100_v38, 4 }
 0x330   :  { %v2108_v40 = vadd.f32 %v2107_v39, %v2100_v38 }
 0x332   :  { %v2109_v41 = vrot.slane %v2108_v40, 2 }
 0x334   :  { %v2110_v42 = vadd.f32 %v2109_v41, %v2108_v40 }
 0x336   :  { %v2111_v43 = vrot.slane %v2110_v42, 1 }
 0x338   :  { %v2112_v44 = vadd.f32 %v2111_v43, %v2110_v42 }
 0x33a   :  { %v2113_v49 = vmul.f32 0.125, %v2112_v44 }
 0x33c   :  { %v2114_v50 = vsub.f32 %v2100_v38, %v2113_v49 }
 0x33e   :  { %v2115_v51 = vmul.f32 %v2114_v50, %v2114_v50 }
 0x340   :  { %v2116_v52 = vrot.slane %v2115_v51, 4 }
 0x342   :  { %v2117_v53 = vadd.f32 %v2116_v52, %v2115_v51 }
 0x344   :  { %v2118_v54 = vrot.slane %v2117_v53, 2 }
 0x346   :  { %v2119_v55 = vadd.f32 %v2118_v54, %v2117_v53 }
 0x348   :  { %v2120_v47 = vrot.slane %v2119_v55, 1 }
 0x34a   :  { %v2121_v56 = vadd.f32 %v2120_v47, %v2119_v55 }
 0x34c   :  { %v2122_v57 = vmul.f32 0.125, %v2121_v56 }
 0x34e   :  { %v2123_v58 = vadd.f32 1e-05, %v2122_v57 }
 0x350   :  { %2818 = vrsqrt.f32 %v2123_v58 }
 0x35a   :  { %v2819_v48 = vpop.eup %2818 }
 0x35b   :  { %v2125_v60 = vmul.f32 %v2819_v48, %v2114_v50 }
 0x35d   :  { %v2132_v62 = vmul.f32 %v2417_v59, %v2125_v60 }
 0x35f   :  { %v2139_v63 = vadd.f32 %v2418_v61, %v2132_v62 }
 0x361   :  { %v2140_v0 = vmul.f32 0.2, %v2139_v63 }
 0x363   :  { %v2141_v3 = vmax.f32 %v2139_v63, %v2140_v0 }
 0x365   :  { %v2149_v4 = vmul.f32 %v2419_v2, %v2141_v3 }
 0x367   :  { %2150 = vadd.xlane.f32.xlu1 %v2149_v4 }
 0x3f4   :  { %v2151_v6 = vpop.xlane.xlu1 %2150 }
 0x3f5   :  { %v2159_v7 = vadd.f32 %v2420_v5, %v2151_v6 }
 0x3f7   :  { %v2421_v8 = vmul.f32 -1.442695, %v2159_v7 }
 0x3f9   :  { %2820 = vpow2.f32 %v2421_v8 }
 0x403   :  { %v2821_v9 = vpop.eup %2820 }
 0x404   :  { %v2163_v10 = vadd.f32 1.0, %v2821_v9 }
 0x406   :  { %2822 = vrcp.f32 %v2163_v10 }
 0x410   :  { %v2823_v11 = vpop.eup %2822 }
 0x411   :  { %2168 = vperm.xlu1 %2460, %v2823_v11  }
 0x490   :  { %v2169_v12 = vpop.permute.xlu1 %2168 }
 0x491   :  { %2171 = vst [vmem:[%s3679_s7] sm:$0xff] %v2169_v12 }

</bundles_post_ra>
